<compile_context>
chip_gen: v7x
topology: tpu7x:2x2x1
jax: 0.10.0
libtpu: 0.0.40
codegen_flags: <defaults>
</compile_context>

<pallas_src>
import functools

import jax
import jax.numpy as jnp
from jax.experimental import pallas as pl
from jax.experimental.pallas import tpu as pltpu


def _make_fused_kernel(layers, num_heads, d, apply_ln, use_bf16_matmul):
    H = num_heads
    hd = d // H

    DN_QKT = (((2,), (2,)), ((0,), (0,)))  # (H,R,hd) x (H,R,hd) -> (H,R,R)
    DN_PV = (((2,), (1,)), ((0,), (0,)))   # (H,R,R)  x (H,R,hd) -> (H,R,hd)

    def kernel(t_ref, x_ref, mask_ref, lnw_ref, lnb_ref, wqkv_ref, bqkv_ref,
               wc_ref, bc_ref, o_ref):
        # x = x + time_fun(t, x), with time_fun(t, x) = t * ones_like(x).
        h = x_ref[...].astype(jnp.float32) + t_ref[0]            # (R, d)

        # Cross-batch-blocking additive mask, hoisted out of the layer loop.
        mask = mask_ref[...]                                      # (R, R)
        mask_b = jnp.broadcast_to(mask[None], (H,) + mask.shape)  # (H, R, R)

        for li in range(layers):                                  # static unroll
            z = h

            # ---- LayerNorm(d) ----
            if apply_ln:
                mu = jnp.mean(z, axis=-1, keepdims=True)
                var = jnp.mean((z - mu) ** 2, axis=-1, keepdims=True)
                z = (z - mu) * jax.lax.rsqrt(var + 1e-5)
                z = z * lnw_ref[li] + lnb_ref[li]                 # (1, d) bcast

            # ---- MultiheadAttention(d, H), q = k = v = z ----
            wqkv = wqkv_ref[li]                                   # (d, 3d)
            zin = z.astype(wqkv.dtype) if use_bf16_matmul else z
            qkv = jnp.dot(zin, wqkv,
                          preferred_element_type=jnp.float32) + bqkv_ref[li]

            # Head-batched q/k/v (the 1/sqrt(hd) scale is folded into W_q/b_q).
            q_b = jnp.stack([qkv[:, h0 * hd:(h0 + 1) * hd]
                             for h0 in range(H)], axis=0)         # (H, R, hd)
            k_b = jnp.stack([qkv[:, d + h0 * hd:d + (h0 + 1) * hd]
                             for h0 in range(H)], axis=0)
            v_b = jnp.stack([qkv[:, 2 * d + h0 * hd:2 * d + (h0 + 1) * hd]
                             for h0 in range(H)], axis=0)

            s = jax.lax.dot_general(q_b, k_b, DN_QKT,
                                    preferred_element_type=jnp.float32)
            s = s + mask_b                                        # block cross-batch
            s = s - jnp.max(s, axis=-1, keepdims=True)
            p = jnp.exp(s)
            p = p / jnp.sum(p, axis=-1, keepdims=True)            # exact softmax
            a_b = jax.lax.dot_general(p, v_b, DN_PV,
                                      preferred_element_type=jnp.float32)

            # Merge heads back to (R, d) with head-major columns (out_proj layout).
            a = jnp.concatenate([a_b[h0] for h0 in range(H)], axis=-1)

            # ---- fused (out_proj o nn.Linear): one (R, d) @ (d, d) GEMM ----
            wc = wc_ref[li]
            ain = a.astype(wc.dtype) if use_bf16_matmul else a
            y = jnp.dot(ain, wc,
                        preferred_element_type=jnp.float32) + bc_ref[li]

            # ---- Mish (dropped on the very last layer: networks[:-1]) ----
            if li < layers - 1:
                sp = jnp.where(y > 20.0, y,
                               jnp.log1p(jnp.exp(jnp.minimum(y, 20.0))))
                y = y * jnp.tanh(sp)

            h = y

        o_ref[...] = h.astype(o_ref.dtype)

    return kernel


def prepare_params(params, num_heads, use_bf16_matmul=False):
    """Stack per-layer params, pre-fuse out_proj+Linear, fold the q scale.

    Runs ONCE outside the jitted forward (these d x d fusion GEMMs and
    relayouts must not be on the per-call path)."""
    d = params[0][2].shape[1]
    hd = d // num_heads
    scale = 1.0 / float(hd) ** 0.5

    # Column scale: 1/sqrt(hd) on the q columns, 1 on k/v columns.
    col_scale = jnp.concatenate(
        [jnp.full((d,), scale, jnp.float32),
         jnp.ones((2 * d,), jnp.float32)])[None, :]               # (1, 3d)

    lnw_l, lnb_l, wqkv_l, bqkv_l, wc_l, bc_l = [], [], [], [], [], []
    for (ln_w, ln_b, inw, inb, ow, ob, lw, lb) in params:
        lnw_l.append(jnp.reshape(ln_w, (1, d)))
        lnb_l.append(jnp.reshape(ln_b, (1, d)))

        # PyTorch in_proj: qkv = z @ inw.T + inb ; fold q scale into weights/bias.
        wqkv_l.append(inw.T * col_scale)                          # (d, 3d)
        bqkv_l.append(jnp.reshape(inb, (1, 3 * d)) * col_scale)   # (1, 3d)

        # Fuse out_proj (ow, ob) with the following nn.Linear (lw, lb):
        #   y = (attn @ ow.T + ob) @ lw.T + lb = attn @ (ow.T @ lw.T) + b_comb
        wc_l.append(ow.T @ lw.T)                                  # (d, d)
        bc_l.append(jnp.reshape(ob, (1, d)) @ lw.T
                    + jnp.reshape(lb, (1, d)))                    # (1, d)

    lnw, lnb, wqkv, bqkv, wc, bc = (
        jnp.stack(a) for a in (lnw_l, lnb_l, wqkv_l, bqkv_l, wc_l, bc_l))
    if use_bf16_matmul:
        wqkv = wqkv.astype(jnp.bfloat16)
        wc = wc.astype(jnp.bfloat16)
    return lnw, lnb, wqkv, bqkv, wc, bc


def func_depth_forward(t, x, prepared, num_heads, apply_ln,
                       use_bf16_matmul=False):
    L, N, d = x.shape
    lnw, lnb, wqkv, bqkv, wc, bc = prepared
    layers = lnw.shape[0]
    R = L * N

    # (L, N, d) -> (L*N, d): trivial collapse, rows stay in (l, n) order so the
    # kernel output reshapes straight back to (L, N, d) with no transpose.
    x2 = jnp.reshape(x, (R, d))
    t_arr = jnp.reshape(jnp.asarray(t, jnp.float32), (1,))

    # Additive mask forbidding attention across batch elements
    # (row r belongs to batch r % N).  Constant-folded under jit.
    batch_id = jnp.arange(R, dtype=jnp.int32) % N
    mask = jnp.where(batch_id[:, None] == batch_id[None, :],
                     0.0, -1e30).astype(jnp.float32)              # (R, R)

    kernel = _make_fused_kernel(layers, num_heads, d, apply_ln,
                                use_bf16_matmul)

    vspec = pl.BlockSpec(memory_space=pltpu.MemorySpace.VMEM)
    out = pl.pallas_call(
        kernel,
        out_shape=jax.ShapeDtypeStruct((R, d), jnp.float32),
        in_specs=[pl.BlockSpec(memory_space=pltpu.MemorySpace.SMEM)]  # t scalar
                 + [vspec] * 8,
        out_specs=vspec,
    )(t_arr, x2, mask, lnw, lnb, wqkv, bqkv, wc, bc)

    return jnp.reshape(out, (L, N, d))


def init_params(key, d, layers):
    params = []
    bound = 1.0 / (d ** 0.5)
    for _ in range(layers):
        key, k0, k1, k2, k3, k4 = jax.random.split(key, 6)
        ln_w = jnp.ones((1, d), jnp.float32)
        ln_b = jnp.zeros((1, d), jnp.float32)
        inw = jax.random.uniform(k0, (3 * d, d), jnp.float32, -bound, bound)
        inb = jax.random.uniform(k1, (1, 3 * d), jnp.float32, -bound, bound)
        ow = jax.random.uniform(k2, (d, d), jnp.float32, -bound, bound)
        ob = jnp.zeros((1, d), jnp.float32)       # MHA out_proj bias init = 0
        lw = jax.random.uniform(k3, (d, d), jnp.float32, -bound, bound)
        lb = jax.random.uniform(k4, (1, d), jnp.float32, -bound, bound)
        params.append((ln_w, ln_b, inw, inb, ow, ob, lw, lb))
    return params


if __name__ == "__main__":
    d = 32
    layers = 2
    num_heads = 4
    BN = True
    L, N = 8, 2  # seq_len, batch

    key = jax.random.PRNGKey(0)
    key, kx = jax.random.split(key)
    x = jax.random.normal(kx, (L, N, d), jnp.float32)
    t = 0.5

    params = init_params(key, d, layers)
    # Hoisted: parameter fusion / re-layout runs exactly once, outside jit.
    prepared = prepare_params(params, num_heads)
    jax.block_until_ready(prepared)

    fwd = jax.jit(functools.partial(
        func_depth_forward, num_heads=num_heads, apply_ln=BN))
    out = fwd(t, x, prepared)
    jax.block_until_ready(out)
    assert out.shape == (L, N, d)
    assert bool(jnp.all(jnp.isfinite(out)))
    print("KERNEL_OK")
</pallas_src>

<mosaic_0001>
module attributes {stable_mosaic.version = 11 : i64} {
  func.func @kernel(%arg0: memref<1xf32, #tpu.memory_space<smem>>, %arg1: memref<16x32xf32, #tpu.memory_space<vmem>>, %arg2: memref<16x16xf32, #tpu.memory_space<vmem>>, %arg3: memref<2x1x32xf32, #tpu.memory_space<vmem>>, %arg4: memref<2x1x32xf32, #tpu.memory_space<vmem>>, %arg5: memref<2x32x96xf32, #tpu.memory_space<vmem>>, %arg6: memref<2x1x96xf32, #tpu.memory_space<vmem>>, %arg7: memref<2x32x32xf32, #tpu.memory_space<vmem>>, %arg8: memref<2x1x32xf32, #tpu.memory_space<vmem>>, %arg9: memref<16x32xf32, #tpu.memory_space<vmem>>) attributes {dimension_semantics = [], scalar_prefetch = 0 : i64, scratch_operands = 0 : i64, tpu.core_type = #tpu.core_type<tc>} {
    %c0 = arith.constant 0 : index
    %c0_0 = arith.constant 0 : index
    %0 = vector.load %arg1[%c0, %c0_0] : memref<16x32xf32, #tpu.memory_space<vmem>>, vector<16x32xf32>
    %c0_1 = arith.constant 0 : index
    %1 = memref.load %arg0[%c0_1] : memref<1xf32, #tpu.memory_space<smem>>
    %2 = vector.broadcast %1 : f32 to vector<16x32xf32>
    %3 = arith.addf %0, %2 : vector<16x32xf32>
    %c0_2 = arith.constant 0 : index
    %c0_3 = arith.constant 0 : index
    %4 = vector.load %arg2[%c0_2, %c0_3] : memref<16x16xf32, #tpu.memory_space<vmem>>, vector<16x16xf32>
    %5 = vector.shape_cast %4 : vector<16x16xf32> to vector<1x16x16xf32>
    %6 = vector.shape_cast %5 : vector<1x16x16xf32> to vector<1x16x16xf32>
    %7 = vector.broadcast %6 : vector<1x16x16xf32> to vector<4x16x16xf32>
    %cst = arith.constant dense<0.000000e+00> : vector<16xf32>
    %8 = vector.multi_reduction <add>, %3, %cst [1] : vector<16x32xf32> to vector<16xf32>
    %9 = vector.shape_cast %8 : vector<16xf32> to vector<16x1xf32>
    %cst_4 = arith.constant 3.200000e+01 : f32
    %10 = vector.broadcast %cst_4 : f32 to vector<16x1xf32>
    %11 = arith.divf %9, %10 : vector<16x1xf32>
    %12 = vector.broadcast %11 : vector<16x1xf32> to vector<16x32xf32>
    %13 = arith.subf %3, %12 : vector<16x32xf32>
    %14 = arith.mulf %13, %13 : vector<16x32xf32>
    %cst_5 = arith.constant dense<0.000000e+00> : vector<16xf32>
    %15 = vector.multi_reduction <add>, %14, %cst_5 [1] : vector<16x32xf32> to vector<16xf32>
    %16 = vector.shape_cast %15 : vector<16xf32> to vector<16x1xf32>
    %cst_6 = arith.constant 3.200000e+01 : f32
    %17 = vector.broadcast %cst_6 : f32 to vector<16x1xf32>
    %18 = arith.divf %16, %17 : vector<16x1xf32>
    %19 = vector.broadcast %11 : vector<16x1xf32> to vector<16x32xf32>
    %20 = arith.subf %3, %19 : vector<16x32xf32>
    %cst_7 = arith.constant 9.99999974E-6 : f32
    %21 = vector.broadcast %cst_7 : f32 to vector<16x1xf32>
    %22 = arith.addf %18, %21 : vector<16x1xf32>
    %23 = math.rsqrt %22 : vector<16x1xf32>
    %24 = vector.broadcast %23 : vector<16x1xf32> to vector<16x32xf32>
    %25 = arith.mulf %20, %24 : vector<16x32xf32>
    %c0_8 = arith.constant 0 : index
    %c0_9 = arith.constant 0 : index
    %c0_10 = arith.constant 0 : index
    %26 = vector.load %arg3[%c0_8, %c0_9, %c0_10] : memref<2x1x32xf32, #tpu.memory_space<vmem>>, vector<1x1x32xf32>
    %27 = vector.shape_cast %26 : vector<1x1x32xf32> to vector<1x32xf32>
    %28 = vector.broadcast %27 : vector<1x32xf32> to vector<16x32xf32>
    %29 = arith.mulf %25, %28 : vector<16x32xf32>
    %c0_11 = arith.constant 0 : index
    %c0_12 = arith.constant 0 : index
    %c0_13 = arith.constant 0 : index
    %30 = vector.load %arg4[%c0_11, %c0_12, %c0_13] : memref<2x1x32xf32, #tpu.memory_space<vmem>>, vector<1x1x32xf32>
    %31 = vector.shape_cast %30 : vector<1x1x32xf32> to vector<1x32xf32>
    %32 = vector.broadcast %31 : vector<1x32xf32> to vector<16x32xf32>
    %33 = arith.addf %29, %32 : vector<16x32xf32>
    %c0_14 = arith.constant 0 : index
    %c0_15 = arith.constant 0 : index
    %c0_16 = arith.constant 0 : index
    %34 = vector.load %arg5[%c0_14, %c0_15, %c0_16] : memref<2x32x96xf32, #tpu.memory_space<vmem>>, vector<1x32x96xf32>
    %35 = vector.shape_cast %34 : vector<1x32x96xf32> to vector<32x96xf32>
    %cst_17 = arith.constant dense<0.000000e+00> : vector<16x96xf32>
    %36 = tpu.matmul %33, %35, %cst_17 {dimension_numbers = #tpu.dot_dimension_numbers<[1], [0], [0], [1], [0, 0, 1, 1], [], []>} : vector<16x32xf32>, vector<32x96xf32>, vector<16x96xf32> -> vector<16x96xf32>
    %c0_18 = arith.constant 0 : index
    %c0_19 = arith.constant 0 : index
    %c0_20 = arith.constant 0 : index
    %37 = vector.load %arg6[%c0_18, %c0_19, %c0_20] : memref<2x1x96xf32, #tpu.memory_space<vmem>>, vector<1x1x96xf32>
    %38 = vector.shape_cast %37 : vector<1x1x96xf32> to vector<1x96xf32>
    %39 = vector.broadcast %38 : vector<1x96xf32> to vector<16x96xf32>
    %40 = arith.addf %36, %39 : vector<16x96xf32>
    %41 = vector.extract_strided_slice %40 {offsets = [0, 0], sizes = [16, 8], strides = [1, 1]} : vector<16x96xf32> to vector<16x8xf32>
    %42 = vector.extract_strided_slice %40 {offsets = [0, 8], sizes = [16, 8], strides = [1, 1]} : vector<16x96xf32> to vector<16x8xf32>
    %43 = vector.extract_strided_slice %40 {offsets = [0, 16], sizes = [16, 8], strides = [1, 1]} : vector<16x96xf32> to vector<16x8xf32>
    %44 = vector.extract_strided_slice %40 {offsets = [0, 24], sizes = [16, 8], strides = [1, 1]} : vector<16x96xf32> to vector<16x8xf32>
    %45 = vector.shape_cast %41 : vector<16x8xf32> to vector<1x16x8xf32>
    %46 = vector.shape_cast %42 : vector<16x8xf32> to vector<1x16x8xf32>
    %47 = vector.shape_cast %43 : vector<16x8xf32> to vector<1x16x8xf32>
    %48 = vector.shape_cast %44 : vector<16x8xf32> to vector<1x16x8xf32>
    %49 = tpu.concatenate %45, %46, %47, %48 in 0 : vector<1x16x8xf32>, vector<1x16x8xf32>, vector<1x16x8xf32>, vector<1x16x8xf32> -> vector<4x16x8xf32>
    %50 = vector.extract_strided_slice %40 {offsets = [0, 32], sizes = [16, 8], strides = [1, 1]} : vector<16x96xf32> to vector<16x8xf32>
    %51 = vector.extract_strided_slice %40 {offsets = [0, 40], sizes = [16, 8], strides = [1, 1]} : vector<16x96xf32> to vector<16x8xf32>
    %52 = vector.extract_strided_slice %40 {offsets = [0, 48], sizes = [16, 8], strides = [1, 1]} : vector<16x96xf32> to vector<16x8xf32>
    %53 = vector.extract_strided_slice %40 {offsets = [0, 56], sizes = [16, 8], strides = [1, 1]} : vector<16x96xf32> to vector<16x8xf32>
    %54 = vector.shape_cast %50 : vector<16x8xf32> to vector<1x16x8xf32>
    %55 = vector.shape_cast %51 : vector<16x8xf32> to vector<1x16x8xf32>
    %56 = vector.shape_cast %52 : vector<16x8xf32> to vector<1x16x8xf32>
    %57 = vector.shape_cast %53 : vector<16x8xf32> to vector<1x16x8xf32>
    %58 = tpu.concatenate %54, %55, %56, %57 in 0 : vector<1x16x8xf32>, vector<1x16x8xf32>, vector<1x16x8xf32>, vector<1x16x8xf32> -> vector<4x16x8xf32>
    %59 = vector.extract_strided_slice %40 {offsets = [0, 64], sizes = [16, 8], strides = [1, 1]} : vector<16x96xf32> to vector<16x8xf32>
    %60 = vector.extract_strided_slice %40 {offsets = [0, 72], sizes = [16, 8], strides = [1, 1]} : vector<16x96xf32> to vector<16x8xf32>
    %61 = vector.extract_strided_slice %40 {offsets = [0, 80], sizes = [16, 8], strides = [1, 1]} : vector<16x96xf32> to vector<16x8xf32>
    %62 = vector.extract_strided_slice %40 {offsets = [0, 88], sizes = [16, 8], strides = [1, 1]} : vector<16x96xf32> to vector<16x8xf32>
    %63 = vector.shape_cast %59 : vector<16x8xf32> to vector<1x16x8xf32>
    %64 = vector.shape_cast %60 : vector<16x8xf32> to vector<1x16x8xf32>
    %65 = vector.shape_cast %61 : vector<16x8xf32> to vector<1x16x8xf32>
    %66 = vector.shape_cast %62 : vector<16x8xf32> to vector<1x16x8xf32>
    %67 = tpu.concatenate %63, %64, %65, %66 in 0 : vector<1x16x8xf32>, vector<1x16x8xf32>, vector<1x16x8xf32>, vector<1x16x8xf32> -> vector<4x16x8xf32>
    %cst_21 = arith.constant dense<0.000000e+00> : vector<4x16x16xf32>
    %68 = tpu.matmul %49, %58, %cst_21 {dimension_numbers = #tpu.dot_dimension_numbers<[2], [2], [1], [1], [0, 0, 0, 1, 1, 1], [0], [0]>} : vector<4x16x8xf32>, vector<4x16x8xf32>, vector<4x16x16xf32> -> vector<4x16x16xf32>
    %69 = arith.addf %68, %7 : vector<4x16x16xf32>
    %cst_22 = arith.constant dense<0xFF800000> : vector<4x16xf32>
    %70 = vector.multi_reduction <maximumf>, %69, %cst_22 [2] : vector<4x16x16xf32> to vector<4x16xf32>
    %71 = vector.shape_cast %70 : vector<4x16xf32> to vector<4x16x1xf32>
    %72 = vector.broadcast %71 : vector<4x16x1xf32> to vector<4x16x16xf32>
    %73 = arith.subf %69, %72 : vector<4x16x16xf32>
    %74 = math.exp %73 : vector<4x16x16xf32>
    %cst_23 = arith.constant dense<0.000000e+00> : vector<4x16xf32>
    %75 = vector.multi_reduction <add>, %74, %cst_23 [2] : vector<4x16x16xf32> to vector<4x16xf32>
    %76 = vector.shape_cast %75 : vector<4x16xf32> to vector<4x16x1xf32>
    %77 = vector.broadcast %76 : vector<4x16x1xf32> to vector<4x16x16xf32>
    %78 = arith.divf %74, %77 : vector<4x16x16xf32>
    %cst_24 = arith.constant dense<0.000000e+00> : vector<4x16x8xf32>
    %79 = tpu.matmul %78, %67, %cst_24 {dimension_numbers = #tpu.dot_dimension_numbers<[2], [1], [1], [2], [0, 0, 0, 1, 1, 2], [0], [0]>} : vector<4x16x16xf32>, vector<4x16x8xf32>, vector<4x16x8xf32> -> vector<4x16x8xf32>
    %80 = vector.extract_strided_slice %79 {offsets = [0, 0, 0], sizes = [1, 16, 8], strides = [1, 1, 1]} : vector<4x16x8xf32> to vector<1x16x8xf32>
    %81 = vector.shape_cast %80 : vector<1x16x8xf32> to vector<16x8xf32>
    %82 = vector.extract_strided_slice %79 {offsets = [1, 0, 0], sizes = [1, 16, 8], strides = [1, 1, 1]} : vector<4x16x8xf32> to vector<1x16x8xf32>
    %83 = vector.shape_cast %82 : vector<1x16x8xf32> to vector<16x8xf32>
    %84 = vector.extract_strided_slice %79 {offsets = [2, 0, 0], sizes = [1, 16, 8], strides = [1, 1, 1]} : vector<4x16x8xf32> to vector<1x16x8xf32>
    %85 = vector.shape_cast %84 : vector<1x16x8xf32> to vector<16x8xf32>
    %86 = vector.extract_strided_slice %79 {offsets = [3, 0, 0], sizes = [1, 16, 8], strides = [1, 1, 1]} : vector<4x16x8xf32> to vector<1x16x8xf32>
    %87 = vector.shape_cast %86 : vector<1x16x8xf32> to vector<16x8xf32>
    %88 = tpu.concatenate %81, %83, %85, %87 in 1 : vector<16x8xf32>, vector<16x8xf32>, vector<16x8xf32>, vector<16x8xf32> -> vector<16x32xf32>
    %c0_25 = arith.constant 0 : index
    %c0_26 = arith.constant 0 : index
    %c0_27 = arith.constant 0 : index
    %89 = vector.load %arg7[%c0_25, %c0_26, %c0_27] : memref<2x32x32xf32, #tpu.memory_space<vmem>>, vector<1x32x32xf32>
    %90 = vector.shape_cast %89 : vector<1x32x32xf32> to vector<32x32xf32>
    %cst_28 = arith.constant dense<0.000000e+00> : vector<16x32xf32>
    %91 = tpu.matmul %88, %90, %cst_28 {dimension_numbers = #tpu.dot_dimension_numbers<[1], [0], [0], [1], [0, 0, 1, 1], [], []>} : vector<16x32xf32>, vector<32x32xf32>, vector<16x32xf32> -> vector<16x32xf32>
    %c0_29 = arith.constant 0 : index
    %c0_30 = arith.constant 0 : index
    %c0_31 = arith.constant 0 : index
    %92 = vector.load %arg8[%c0_29, %c0_30, %c0_31] : memref<2x1x32xf32, #tpu.memory_space<vmem>>, vector<1x1x32xf32>
    %93 = vector.shape_cast %92 : vector<1x1x32xf32> to vector<1x32xf32>
    %94 = vector.broadcast %93 : vector<1x32xf32> to vector<16x32xf32>
    %95 = arith.addf %91, %94 : vector<16x32xf32>
    %cst_32 = arith.constant 2.000000e+01 : f32
    %96 = vector.broadcast %cst_32 : f32 to vector<16x32xf32>
    %97 = arith.cmpf ogt, %95, %96 : vector<16x32xf32>
    %cst_33 = arith.constant 2.000000e+01 : f32
    %98 = vector.broadcast %cst_33 : f32 to vector<16x32xf32>
    %99 = arith.minimumf %95, %98 : vector<16x32xf32>
    %100 = math.exp %99 : vector<16x32xf32>
    %101 = math.log1p %100 : vector<16x32xf32>
    %102 = arith.select %97, %95, %101 : vector<16x32xi1>, vector<16x32xf32>
    %103 = math.tanh %102 : vector<16x32xf32>
    %104 = arith.mulf %95, %103 : vector<16x32xf32>
    %cst_34 = arith.constant dense<0.000000e+00> : vector<16xf32>
    %105 = vector.multi_reduction <add>, %104, %cst_34 [1] : vector<16x32xf32> to vector<16xf32>
    %106 = vector.shape_cast %105 : vector<16xf32> to vector<16x1xf32>
    %cst_35 = arith.constant 3.200000e+01 : f32
    %107 = vector.broadcast %cst_35 : f32 to vector<16x1xf32>
    %108 = arith.divf %106, %107 : vector<16x1xf32>
    %109 = vector.broadcast %108 : vector<16x1xf32> to vector<16x32xf32>
    %110 = arith.subf %104, %109 : vector<16x32xf32>
    %111 = arith.mulf %110, %110 : vector<16x32xf32>
    %cst_36 = arith.constant dense<0.000000e+00> : vector<16xf32>
    %112 = vector.multi_reduction <add>, %111, %cst_36 [1] : vector<16x32xf32> to vector<16xf32>
    %113 = vector.shape_cast %112 : vector<16xf32> to vector<16x1xf32>
    %cst_37 = arith.constant 3.200000e+01 : f32
    %114 = vector.broadcast %cst_37 : f32 to vector<16x1xf32>
    %115 = arith.divf %113, %114 : vector<16x1xf32>
    %116 = vector.broadcast %108 : vector<16x1xf32> to vector<16x32xf32>
    %117 = arith.subf %104, %116 : vector<16x32xf32>
    %cst_38 = arith.constant 9.99999974E-6 : f32
    %118 = vector.broadcast %cst_38 : f32 to vector<16x1xf32>
    %119 = arith.addf %115, %118 : vector<16x1xf32>
    %120 = math.rsqrt %119 : vector<16x1xf32>
    %121 = vector.broadcast %120 : vector<16x1xf32> to vector<16x32xf32>
    %122 = arith.mulf %117, %121 : vector<16x32xf32>
    %c1 = arith.constant 1 : index
    %c0_39 = arith.constant 0 : index
    %c0_40 = arith.constant 0 : index
    %123 = vector.load %arg3[%c1, %c0_39, %c0_40] : memref<2x1x32xf32, #tpu.memory_space<vmem>>, vector<1x1x32xf32>
    %124 = vector.shape_cast %123 : vector<1x1x32xf32> to vector<1x32xf32>
    %125 = vector.broadcast %124 : vector<1x32xf32> to vector<16x32xf32>
    %126 = arith.mulf %122, %125 : vector<16x32xf32>
    %c1_41 = arith.constant 1 : index
    %c0_42 = arith.constant 0 : index
    %c0_43 = arith.constant 0 : index
    %127 = vector.load %arg4[%c1_41, %c0_42, %c0_43] : memref<2x1x32xf32, #tpu.memory_space<vmem>>, vector<1x1x32xf32>
    %128 = vector.shape_cast %127 : vector<1x1x32xf32> to vector<1x32xf32>
    %129 = vector.broadcast %128 : vector<1x32xf32> to vector<16x32xf32>
    %130 = arith.addf %126, %129 : vector<16x32xf32>
    %c1_44 = arith.constant 1 : index
    %c0_45 = arith.constant 0 : index
    %c0_46 = arith.constant 0 : index
    %131 = vector.load %arg5[%c1_44, %c0_45, %c0_46] : memref<2x32x96xf32, #tpu.memory_space<vmem>>, vector<1x32x96xf32>
    %132 = vector.shape_cast %131 : vector<1x32x96xf32> to vector<32x96xf32>
    %cst_47 = arith.constant dense<0.000000e+00> : vector<16x96xf32>
    %133 = tpu.matmul %130, %132, %cst_47 {dimension_numbers = #tpu.dot_dimension_numbers<[1], [0], [0], [1], [0, 0, 1, 1], [], []>} : vector<16x32xf32>, vector<32x96xf32>, vector<16x96xf32> -> vector<16x96xf32>
    %c1_48 = arith.constant 1 : index
    %c0_49 = arith.constant 0 : index
    %c0_50 = arith.constant 0 : index
    %134 = vector.load %arg6[%c1_48, %c0_49, %c0_50] : memref<2x1x96xf32, #tpu.memory_space<vmem>>, vector<1x1x96xf32>
    %135 = vector.shape_cast %134 : vector<1x1x96xf32> to vector<1x96xf32>
    %136 = vector.broadcast %135 : vector<1x96xf32> to vector<16x96xf32>
    %137 = arith.addf %133, %136 : vector<16x96xf32>
    %138 = vector.extract_strided_slice %137 {offsets = [0, 0], sizes = [16, 8], strides = [1, 1]} : vector<16x96xf32> to vector<16x8xf32>
    %139 = vector.extract_strided_slice %137 {offsets = [0, 8], sizes = [16, 8], strides = [1, 1]} : vector<16x96xf32> to vector<16x8xf32>
    %140 = vector.extract_strided_slice %137 {offsets = [0, 16], sizes = [16, 8], strides = [1, 1]} : vector<16x96xf32> to vector<16x8xf32>
    %141 = vector.extract_strided_slice %137 {offsets = [0, 24], sizes = [16, 8], strides = [1, 1]} : vector<16x96xf32> to vector<16x8xf32>
    %142 = vector.shape_cast %138 : vector<16x8xf32> to vector<1x16x8xf32>
    %143 = vector.shape_cast %139 : vector<16x8xf32> to vector<1x16x8xf32>
    %144 = vector.shape_cast %140 : vector<16x8xf32> to vector<1x16x8xf32>
    %145 = vector.shape_cast %141 : vector<16x8xf32> to vector<1x16x8xf32>
    %146 = tpu.concatenate %142, %143, %144, %145 in 0 : vector<1x16x8xf32>, vector<1x16x8xf32>, vector<1x16x8xf32>, vector<1x16x8xf32> -> vector<4x16x8xf32>
    %147 = vector.extract_strided_slice %137 {offsets = [0, 32], sizes = [16, 8], strides = [1, 1]} : vector<16x96xf32> to vector<16x8xf32>
    %148 = vector.extract_strided_slice %137 {offsets = [0, 40], sizes = [16, 8], strides = [1, 1]} : vector<16x96xf32> to vector<16x8xf32>
    %149 = vector.extract_strided_slice %137 {offsets = [0, 48], sizes = [16, 8], strides = [1, 1]} : vector<16x96xf32> to vector<16x8xf32>
    %150 = vector.extract_strided_slice %137 {offsets = [0, 56], sizes = [16, 8], strides = [1, 1]} : vector<16x96xf32> to vector<16x8xf32>
    %151 = vector.shape_cast %147 : vector<16x8xf32> to vector<1x16x8xf32>
    %152 = vector.shape_cast %148 : vector<16x8xf32> to vector<1x16x8xf32>
    %153 = vector.shape_cast %149 : vector<16x8xf32> to vector<1x16x8xf32>
    %154 = vector.shape_cast %150 : vector<16x8xf32> to vector<1x16x8xf32>
    %155 = tpu.concatenate %151, %152, %153, %154 in 0 : vector<1x16x8xf32>, vector<1x16x8xf32>, vector<1x16x8xf32>, vector<1x16x8xf32> -> vector<4x16x8xf32>
    %156 = vector.extract_strided_slice %137 {offsets = [0, 64], sizes = [16, 8], strides = [1, 1]} : vector<16x96xf32> to vector<16x8xf32>
    %157 = vector.extract_strided_slice %137 {offsets = [0, 72], sizes = [16, 8], strides = [1, 1]} : vector<16x96xf32> to vector<16x8xf32>
    %158 = vector.extract_strided_slice %137 {offsets = [0, 80], sizes = [16, 8], strides = [1, 1]} : vector<16x96xf32> to vector<16x8xf32>
    %159 = vector.extract_strided_slice %137 {offsets = [0, 88], sizes = [16, 8], strides = [1, 1]} : vector<16x96xf32> to vector<16x8xf32>
    %160 = vector.shape_cast %156 : vector<16x8xf32> to vector<1x16x8xf32>
    %161 = vector.shape_cast %157 : vector<16x8xf32> to vector<1x16x8xf32>
    %162 = vector.shape_cast %158 : vector<16x8xf32> to vector<1x16x8xf32>
    %163 = vector.shape_cast %159 : vector<16x8xf32> to vector<1x16x8xf32>
    %164 = tpu.concatenate %160, %161, %162, %163 in 0 : vector<1x16x8xf32>, vector<1x16x8xf32>, vector<1x16x8xf32>, vector<1x16x8xf32> -> vector<4x16x8xf32>
    %cst_51 = arith.constant dense<0.000000e+00> : vector<4x16x16xf32>
    %165 = tpu.matmul %146, %155, %cst_51 {dimension_numbers = #tpu.dot_dimension_numbers<[2], [2], [1], [1], [0, 0, 0, 1, 1, 1], [0], [0]>} : vector<4x16x8xf32>, vector<4x16x8xf32>, vector<4x16x16xf32> -> vector<4x16x16xf32>
    %166 = arith.addf %165, %7 : vector<4x16x16xf32>
    %cst_52 = arith.constant dense<0xFF800000> : vector<4x16xf32>
    %167 = vector.multi_reduction <maximumf>, %166, %cst_52 [2] : vector<4x16x16xf32> to vector<4x16xf32>
    %168 = vector.shape_cast %167 : vector<4x16xf32> to vector<4x16x1xf32>
    %169 = vector.broadcast %168 : vector<4x16x1xf32> to vector<4x16x16xf32>
    %170 = arith.subf %166, %169 : vector<4x16x16xf32>
    %171 = math.exp %170 : vector<4x16x16xf32>
    %cst_53 = arith.constant dense<0.000000e+00> : vector<4x16xf32>
    %172 = vector.multi_reduction <add>, %171, %cst_53 [2] : vector<4x16x16xf32> to vector<4x16xf32>
    %173 = vector.shape_cast %172 : vector<4x16xf32> to vector<4x16x1xf32>
    %174 = vector.broadcast %173 : vector<4x16x1xf32> to vector<4x16x16xf32>
    %175 = arith.divf %171, %174 : vector<4x16x16xf32>
    %cst_54 = arith.constant dense<0.000000e+00> : vector<4x16x8xf32>
    %176 = tpu.matmul %175, %164, %cst_54 {dimension_numbers = #tpu.dot_dimension_numbers<[2], [1], [1], [2], [0, 0, 0, 1, 1, 2], [0], [0]>} : vector<4x16x16xf32>, vector<4x16x8xf32>, vector<4x16x8xf32> -> vector<4x16x8xf32>
    %177 = vector.extract_strided_slice %176 {offsets = [0, 0, 0], sizes = [1, 16, 8], strides = [1, 1, 1]} : vector<4x16x8xf32> to vector<1x16x8xf32>
    %178 = vector.shape_cast %177 : vector<1x16x8xf32> to vector<16x8xf32>
    %179 = vector.extract_strided_slice %176 {offsets = [1, 0, 0], sizes = [1, 16, 8], strides = [1, 1, 1]} : vector<4x16x8xf32> to vector<1x16x8xf32>
    %180 = vector.shape_cast %179 : vector<1x16x8xf32> to vector<16x8xf32>
    %181 = vector.extract_strided_slice %176 {offsets = [2, 0, 0], sizes = [1, 16, 8], strides = [1, 1, 1]} : vector<4x16x8xf32> to vector<1x16x8xf32>
    %182 = vector.shape_cast %181 : vector<1x16x8xf32> to vector<16x8xf32>
    %183 = vector.extract_strided_slice %176 {offsets = [3, 0, 0], sizes = [1, 16, 8], strides = [1, 1, 1]} : vector<4x16x8xf32> to vector<1x16x8xf32>
    %184 = vector.shape_cast %183 : vector<1x16x8xf32> to vector<16x8xf32>
    %185 = tpu.concatenate %178, %180, %182, %184 in 1 : vector<16x8xf32>, vector<16x8xf32>, vector<16x8xf32>, vector<16x8xf32> -> vector<16x32xf32>
    %c1_55 = arith.constant 1 : index
    %c0_56 = arith.constant 0 : index
    %c0_57 = arith.constant 0 : index
    %186 = vector.load %arg7[%c1_55, %c0_56, %c0_57] : memref<2x32x32xf32, #tpu.memory_space<vmem>>, vector<1x32x32xf32>
    %187 = vector.shape_cast %186 : vector<1x32x32xf32> to vector<32x32xf32>
    %cst_58 = arith.constant dense<0.000000e+00> : vector<16x32xf32>
    %188 = tpu.matmul %185, %187, %cst_58 {dimension_numbers = #tpu.dot_dimension_numbers<[1], [0], [0], [1], [0, 0, 1, 1], [], []>} : vector<16x32xf32>, vector<32x32xf32>, vector<16x32xf32> -> vector<16x32xf32>
    %c1_59 = arith.constant 1 : index
    %c0_60 = arith.constant 0 : index
    %c0_61 = arith.constant 0 : index
    %189 = vector.load %arg8[%c1_59, %c0_60, %c0_61] : memref<2x1x32xf32, #tpu.memory_space<vmem>>, vector<1x1x32xf32>
    %190 = vector.shape_cast %189 : vector<1x1x32xf32> to vector<1x32xf32>
    %191 = vector.broadcast %190 : vector<1x32xf32> to vector<16x32xf32>
    %192 = arith.addf %188, %191 : vector<16x32xf32>
    %c0_62 = arith.constant 0 : index
    %c0_63 = arith.constant 0 : index
    %193 = vector.load %arg9[%c0_62, %c0_63] : memref<16x32xf32, #tpu.memory_space<vmem>>, vector<16x32xf32>
    tpu.vector_store %arg9[%c0_62, %c0_63], %192 {strides = array<i32>} : memref<16x32xf32, #tpu.memory_space<vmem>>, vector<16x32xf32>,
    return
  }
}

</mosaic_0001>

<bundles_post_ra>
// kernel: func_depth_forward.1
= control target key start
LH: loop header
LB: loop body
LE: loop exit
PB: predicated region body
PF: predicated region fallthrough
CT: control target
= control target key end

     0   :  { %15 = vsyncpa [#allocation4], 0  ;;  %s3331_s0 = inlined_call_operand.<no memory space> [shape: f32[1], index: 0, kind: input, shape index: {}]   ;;  %s3332_s1 = inlined_call_operand.vmem [shape: f32[16,32], index: 1, kind: input, shape index: {}]   ;;  %s3333_s2 = inlined_call_operand.vmem [shape: f32[16,16], index: 2, kind: input, shape index: {}]   ;;  %s3334_s3 = inlined_call_operand.vmem [shape: f32[2,1,32], index: 3, kind: input, shape index: {}]   ;;  %s3335_s4 = inlined_call_operand.vmem [shape: f32[2,1,32], index: 4, kind: input, shape index: {}]   ;;  %s3336_s5 = inlined_call_operand.hbm [shape: f32[2,32,96], index: 5, kind: input, shape index: {}]   ;;  %s3337_s6 = inlined_call_operand.vmem [shape: f32[2,1,96], index: 6, kind: input, shape index: {}]   ;;  %s3338_s7 = inlined_call_operand.hbm [shape: f32[2,32,32], index: 7, kind: input, shape index: {}]   ;;  %s3339_s8 = inlined_call_operand.vmem [shape: f32[2,1,32], index: 8, kind: input, shape index: {}]   ;;  %s3340_s9 = inlined_call_operand.hbm [shape: f32[16,32], index: 9, kind: output, shape index: {}]  }
   0x1   :  { %16 = vsyncpa [#allocation7], 0 }
   0x2   :  { %17 = vsyncpa [#allocation5], 0  ;;  %s2917_s30 = smov [#allocation3]   ;;  %s2845_s13 = scalar_lea.hbm %s3336_s5, 1024 }
   0x3   :  { %s33_s10 = sshll.u32 %s2917_s30, 4  ;;  %p2846_p0 = scmp.ne.s32.totalorder %s3336_s5, %s2845_s13  ;;  %s34_s10 = int_to_ptr.vmem [resolvable:$true] %s33_s10 }
   0x4   :  { %p2849_p1 = scmp.lt.u32.totalorder %s2845_s13, %s3336_s5 }
   0x6   :  { %p2851_p2 = pnand %p2849_p1, %p2846_p0 }
   0x8   :  { %2854 = shalt.err (!%p2851_p2)
}
   0x9   :  { %s2855_s18 = scalar_lea.vmem %s34_s10, 1024  ;;  %p2860_p4 = scmp.lt.s32.totalorder %s34_s10, %s34_s10 }
   0xa   :  { %p2856_p3 = scmp.ne.s32.totalorder %s34_s10, %s2855_s18  ;;  %p2861_p5 = scmp.lt.s32.totalorder %s2855_s18, %s2855_s18 }
   0xc   :  { %p2862_p6 = por %p2861_p5, %p2860_p4 }
   0xe   :  { %p2863_p7 = pnand %p2862_p6, %p2856_p3 }
  0x10   :  { %2866 = shalt.err (!%p2863_p7)
}
  0x11   :  { %s2918_s19 = smov 128   ;;  %s2919_s20 = smov 8  }
  0x12   :  { %39 = dma.hbm_to_vmem [thread:$0]  %s3336_s5, 1024, %s34_s10, [#allocation4], %s2918_s19, %s2918_s19, %s2919_s20  }
  0x13   :  { %s2920_s23 = smov [#allocation6]   ;;  %s2867_s27 = scalar_lea.hbm %s3338_s7, 1024 }
  0x14   :  { %s47_s24 = sshll.u32 %s2920_s23, 4  ;;  %p2868_p8 = scmp.ne.s32.totalorder %s3338_s7, %s2867_s27  ;;  %s48_s24 = int_to_ptr.vmem [resolvable:$true] %s47_s24 }
  0x15   :  { %p2871_p9 = scmp.lt.u32.totalorder %s2867_s27, %s3338_s7 }
  0x17   :  { %p2873_p10 = pnand %p2871_p9, %p2868_p8 }
  0x19   :  { %2876 = shalt.err (!%p2873_p10)
}
  0x1a   :  { %s2877_s12 = scalar_lea.vmem %s48_s24, 1024  ;;  %p2882_p12 = scmp.lt.s32.totalorder %s48_s24, %s48_s24 }
  0x1b   :  { %p2878_p11 = scmp.ne.s32.totalorder %s48_s24, %s2877_s12  ;;  %p2883_p13 = scmp.lt.s32.totalorder %s2877_s12, %s2877_s12 }
  0x1d   :  { %p2884_p0 = por %p2883_p13, %p2882_p12 }
  0x1f   :  { %p2885_p1 = pnand %p2884_p0, %p2878_p11 }
  0x21   :  { %2888 = shalt.err (!%p2885_p1)
}
  0x22   :  { %53 = dma.hbm_to_vmem [thread:$0]  %s3338_s7, 1024, %s48_s24, [#allocation7], %s2918_s19, %s2918_s19, %s2919_s20  }
  0x23   :  { %2911 = dma.done.wait [#allocation4], 1024  }
  0x24   :  { %2912 = vsyncadd [#allocation4], 4294966272 }
  0x25   :  { %2913 = dma.done.wait [#allocation7], 1024  }
  0x26   :  { %2914 = vsyncadd [#allocation7], 4294966272  ;;  %v65_v0 = vstv %s3331_s0  ;;  %v62_v1 = vld [vmem:[%s3332_s1] sm:$0xff]  ;;  %vm70_vm0 = vcmask 261120   ;;  %v63_v2 = vld [vmem:[%s3332_s1 + $0x8] sm:$0xff]  ;;  %vm226_vm1 = vcmask 64512  }
  0x27   :  { %v66_v3 = vadd.f32 %v65_v0, %v62_v1  ;;  %v67_v4 = vadd.f32 %v65_v0, %v63_v2  ;;  %v116_v17 = vld [vmem:[#allocation3] sm:$0xff]  ;;  %v117_v18 = vld [vmem:[#allocation3 + $0x8] sm:$0xff]  ;;  %v118_v19 = vld [vmem:[#allocation3 + $0x10] sm:$0xff]  ;;  %s2921_s24 = smov 120   ;;  %s2922_s25 = smov 112   ;;  %vm571_vm3 = vcmask 130048  }
  0x28   :  { %v2557_v20 = vpack.c.bf16 %v117_v18, %v116_v17  ;;  %v119_v21 = vld [vmem:[#allocation3 + $0x18] sm:$0xff]  ;;  %v2245_v30 = vld [vmem:[%s3334_s3] ss:$0 sm:$0xff]  ;;  %s2923_s26 = smov 104   ;;  %s2924_s27 = smov 96   ;;  %vm3055_vm2 = vmpackc.low %vm226_vm1, %vm226_vm1  ;;  %vm1036_vm4 = vcmask 195584  }
  0x29   :  { %v71_v5 = vsel %vm70_vm0, %v66_v3, 0.0  ;;  %v74_v6 = vsel %vm70_vm0, %v67_v4, 0.0  ;;  %v2561_v22 = vpack.c.bf16 %v119_v21, %v118_v19  ;;  %v2246_v32 = vld [vmem:[%s3335_s4] ss:$0 sm:$0xff]  ;;  %s2926_s12 = smov 16   ;;  %s2927_s5 = smov 24  }
  0x2a   :  { %72 = vadd.xlane.f32.xlu0 %v71_v5  ;;  %2558 = vmatprep.subr.bf16.mxu0 %v2557_v20  ;;  %v2247_v39 = vld [vmem:[%s3337_s6] ss:$0 sm:$0xff] }
  0x2b   :  { %2560 = vmatpush3.bf16.msra.mxu0 %v2557_v20 }
  0x2c   :  { %2562 = vmatprep.subr.bf16.mxu0 %v2561_v22 }
  0x2e   :  { %75 = vadd.xlane.f32.xlu0 %v74_v6 }
  0x2f   :  { %2564 = vmatpush3.bf16.msra.mxu0 %v2561_v22 }
  0xb7   :  { %v73_v7 = vpop.xlane.xlu0 %72 }
  0xb8   :  { %v78_v8 = vmul.f32 0.03125, %v73_v7  ;;  %v3088_v7 = vld [vmem:[%s3333_s2 + $0x8] sm:$0xff] }
  0xba   :  { %v80_v9 = vsub.f32 %v66_v3, %v78_v8  ;;  %v3093_v8 = vld [vmem:[%s3333_s2] sm:$0xff]  ;;  %s2925_s2 = smov 64  }
  0xbb   :  { %v76_v10 = vpop.xlane.xlu0 %75 }
  0xbc   :  { %v79_v11 = vmul.f32 0.03125, %v76_v10  ;;  %v82_v12 = vmul.f32 %v80_v9, %v80_v9 }
  0xbe   :  { %v81_v13 = vsub.f32 %v67_v4, %v79_v11  ;;  %v84_v14 = vsel %vm70_vm0, %v82_v12, 0.0 }
  0xbf   :  { %85 = vadd.xlane.f32.xlu1 %v84_v14 }
  0xc0   :  { %v83_v15 = vmul.f32 %v81_v13, %v81_v13 }
  0xc2   :  { %v87_v16 = vsel %vm70_vm0, %v83_v15, 0.0 }
  0xc3   :  { %88 = vadd.xlane.f32.xlu1 %v87_v16 }
 0x14c   :  { %v86_v23 = vpop.xlane.xlu1 %85 }
 0x14d   :  { %v90_v24 = vmul.f32 0.03125, %v86_v23 }
 0x14f   :  { %v92_v25 = vadd.f32 1e-05, %v90_v24 }
 0x150   :  { %v89_v26 = vpop.xlane.xlu1 %88 }
 0x151   :  { %2761 = vrsqrt.f32 %v92_v25  ;;  %v91_v27 = vmul.f32 0.03125, %v89_v26 }
 0x153   :  { %v93_v28 = vadd.f32 1e-05, %v91_v27 }
 0x155   :  { %2763 = vrsqrt.f32 %v93_v28 }
 0x15b   :  { %v2762_v29 = vpop.eup %2761 }
 0x15c   :  { %v96_v31 = vmul.f32 %v2762_v29, %v80_v9 }
 0x15e   :  { %v105_v33 = vmul.f32 %v2245_v30, %v96_v31 }
 0x15f   :  { %v2764_v34 = vpop.eup %2763 }
 0x160   :  { %v97_v35 = vmul.f32 %v2764_v34, %v81_v13  ;;  %v114_v36 = vadd.f32 %v2246_v32, %v105_v33 }
 0x162   :  { %v106_v37 = vmul.f32 %v2245_v30, %v97_v35  ;;  %2409 = vmatprep.mubr.msk.f32.mxu0 %vm70_vm0, %v114_v36 }
 0x164   :  { %v115_v38 = vadd.f32 %v2246_v32, %v106_v37 }
 0x166   :  { %2410 = vmatmul.mubr.msk.f32.vlgmr.msra.gmra.mrb[0].mxu0 %vm70_vm0, %v115_v38 }
 0x239   :  { %v2411_v40 = vpop.f32.mrb[0].mxu0 }
 0x23a   :  { %v205_v41 = vadd.f32 %v2411_v40, %v2247_v39  ;;  %v199_v42 = vpop.f32.mrb[1].mxu0 }
 0x23b   :  { %v200_v43 = vadd.f32 %v2247_v39, %v199_v42 }
 0x23c   :  { %212 = vrot.lane.b32.xlu1 %v205_v41, %s2921_s24 }
 0x23d   :  { %210 = vrot.lane.b32.xlu0 %v200_v43, %s2921_s24  ;;  %2416 = vmatprep.mubr.msk.f32.mxu1 %vm226_vm1, %v200_v43  ;;  %v3038_v44 = vpack.i.bf16 %v205_v41, %v200_v43 }
 0x240   :  { %216 = vrot.lane.b32.xlu1 %v205_v41, %s2922_s25 }
 0x241   :  { %218 = vrot.lane.b32.xlu0 %v200_v43, %s2923_s26 }
 0x244   :  { %214 = vrot.lane.b32.xlu1 %v200_v43, %s2922_s25 }
 0x245   :  { %2682 = vrot.lane.b32.xlu0 %v3038_v44, %s2924_s27 }
 0x248   :  { %220 = vrot.lane.b32.xlu1 %v205_v41, %s2923_s26 }
 0x2ae   :  { %v213_v45 = vpop.permute.xlu1 %212 }
 0x2af   :  { %v211_v46 = vpop.permute.xlu0 %210 }
 0x2b0   :  { %v3044_v47 = vpack.i.bf16 %v213_v45, %v211_v46  ;;  %2423 = vmatprep.mubr.msk.f32.mxu0 %vm226_vm1, %v211_v46 }
 0x2b2   :  { %v217_v48 = vpop.permute.xlu1 %216  ;;  %2687 = vrot.lane.b32.xlu1 %v3044_v47, %s2924_s27 }
 0x2b3   :  { %v219_v49 = vpop.permute.xlu0 %218 }
 0x2b6   :  { %v215_v50 = vpop.permute.xlu1 %214 }
 0x2b7   :  { %v3049_v51 = vpack.i.bf16 %v217_v48, %v215_v50  ;;  %v2683_v52 = vpop.permute.xlu0 %2682 }
 0x2b8   :  { %v2685_v53 = vunpack.i.h.bf16 %v2683_v52  ;;  %v2684_v54 = vunpack.i.l.bf16 %v2683_v52 }
 0x2b9   :  { %2692 = vrot.lane.b32.xlu0 %v3049_v51, %s2924_s27 }
 0x2ba   :  { %v221_v56 = vpop.permute.xlu1 %220  ;;  %v2565_v57 = vpack.c.bf16 %v2685_v53, %v2684_v54 }
 0x2bb   :  { %v3059_v58 = vpack.i.bf16 %v221_v56, %v219_v49 }
 0x2bc   :  { %2567 = vmatprep.subr.msk.bf16.mxu1 %vm3055_vm2, %v2565_v57 }
 0x2bd   :  { %2697 = vrot.lane.b32.xlu1 %v3059_v58, %s2924_s27  ;;  %2570 = vmatpush3.bf16.xpose.msk.msra.mxu1 %vm3055_vm2, %v2565_v57 }
 0x2c4   :  { %2417 = vmatmul.mubr.msk.f32.vlgmr.msra.gmra.mrb[0].mxu1 %vm226_vm1, %v205_v41 }
 0x2c5   :  { %2430 = vmatprep.mubr.msk.f32.mxu1 %vm226_vm1, %v215_v50 }
 0x324   :  { %v2688_v59 = vpop.permute.xlu1 %2687 }
 0x325   :  { %v2690_v60 = vunpack.i.h.bf16 %v2688_v59  ;;  %v2689_v61 = vunpack.i.l.bf16 %v2688_v59 }
 0x327   :  { %v2571_v62 = vpack.c.bf16 %v2690_v60, %v2689_v61 }
 0x329   :  { %2573 = vmatprep.subr.msk.bf16.mxu0 %vm3055_vm2, %v2571_v62 }
 0x32a   :  { %2576 = vmatpush3.bf16.xpose.msk.msra.mxu0 %vm3055_vm2, %v2571_v62 }
 0x32b   :  { %v2693_v63 = vpop.permute.xlu0 %2692 }
 0x32c   :  { %v2695_v0 = vunpack.i.h.bf16 %v2693_v63  ;;  %v2694_v1 = vunpack.i.l.bf16 %v2693_v63 }
 0x32e   :  { %v2577_v2 = vpack.c.bf16 %v2695_v0, %v2694_v1 }
 0x32f   :  { %v2698_v3 = vpop.permute.xlu1 %2697 }
 0x330   :  { %v2700_v4 = vunpack.i.h.bf16 %v2698_v3  ;;  %v2699_v5 = vunpack.i.l.bf16 %v2698_v3  ;;  %2579 = vmatprep.subr.msk.bf16.mxu1 %vm3055_vm2, %v2577_v2 }
 0x331   :  { %2424 = vmatmul.mubr.msk.f32.vlgmr.msra.gmra.mrb[2].mxu0 %vm226_vm1, %v213_v45  ;;  %2582 = vmatpush3.bf16.xpose.msk.msra.mxu1 %vm3055_vm2, %v2577_v2 }
 0x332   :  { %v2583_v6 = vpack.c.bf16 %v2700_v4, %v2699_v5  ;;  %2437 = vmatprep.mubr.msk.f32.mxu0 %vm226_vm1, %v219_v49 }
 0x334   :  { %2585 = vmatprep.subr.msk.bf16.mxu0 %vm3055_vm2, %v2583_v6 }
 0x335   :  { %2588 = vmatpush3.bf16.xpose.msk.msra.mxu0 %vm3055_vm2, %v2583_v6 }
 0x338   :  { %2431 = vmatmul.mubr.msk.f32.vlgmr.msra.gmra.mrb[2].mxu1 %vm226_vm1, %v217_v48 }
 0x33c   :  { %2438 = vmatmul.mubr.msk.f32.vlgmr.msra.gmra.mrb[4].mxu0 %vm226_vm1, %v221_v56 }
 0x397   :  { %v2418_v9 = vpop.f32.mrb[0].mxu1 }
 0x398   :  { %v307_v10 = vadd.f32 %v2418_v9, %v3088_v7  ;;  %v301_v11 = vpop.f32.mrb[1].mxu1 }
 0x399   :  { %v302_v12 = vadd.f32 %v301_v11, %v3093_v8 }
 0x39a   :  { %v575_v13 = vsel %vm571_vm3, %v307_v10, -inf }
 0x39b   :  { %576 = vmax.xlane.f32.xlu1 %v575_v13  ;;  %v572_v14 = vsel %vm571_vm3, %v302_v12, -inf }
 0x39c   :  { %573 = vmax.xlane.f32.xlu0 %v572_v14 }
 0x404   :  { %v2425_v15 = vpop.f32.mrb[2].mxu0 }
 0x405   :  { %v394_v16 = vadd.f32 %v2425_v15, %v3088_v7  ;;  %v388_v17 = vpop.f32.mrb[3].mxu0 }
 0x406   :  { %v389_v18 = vadd.f32 %v388_v17, %v3093_v8 }
 0x407   :  { %v581_v19 = vsel %vm571_vm3, %v394_v16, -inf }
 0x408   :  { %582 = vmax.xlane.f32.xlu0 %v581_v19  ;;  %v578_v21 = vsel %vm571_vm3, %v389_v18, -inf }
 0x40b   :  { %v2432_v20 = vpop.f32.mrb[2].mxu1 }
 0x40c   :  { %v481_v22 = vadd.f32 %v2432_v20, %v3088_v7  ;;  %v475_v23 = vpop.f32.mrb[3].mxu1  ;;  %579 = vmax.xlane.f32.xlu0 %v578_v21 }
 0x40d   :  { %v476_v24 = vadd.f32 %v475_v23, %v3093_v8 }
 0x40e   :  { %v587_v25 = vsel %vm571_vm3, %v481_v22, -inf }
 0x40f   :  { %v2439_v26 = vpop.f32.mrb[4].mxu0  ;;  %588 = vmax.xlane.f32.xlu1 %v587_v25  ;;  %v584_v27 = vsel %vm571_vm3, %v476_v24, -inf }
 0x410   :  { %v568_v28 = vadd.f32 %v2439_v26, %v3088_v7  ;;  %v562_v29 = vpop.f32.mrb[5].mxu0  ;;  %585 = vmax.xlane.f32.xlu0 %v584_v27 }
 0x411   :  { %v563_v30 = vadd.f32 %v562_v29, %v3093_v8 }
 0x412   :  { %v593_v31 = vsel %vm571_vm3, %v568_v28, -inf }
 0x413   :  { %594 = vmax.xlane.f32.xlu1 %v593_v31  ;;  %v590_v32 = vsel %vm571_vm3, %v563_v30, -inf }
 0x414   :  { %591 = vmax.xlane.f32.xlu0 %v590_v32 }
 0x428   :  { %v577_v33 = vpop.xlane.xlu1 %576 }
 0x429   :  { %v597_v34 = vsub.f32 %v307_v10, %v577_v33  ;;  %v574_v35 = vpop.xlane.xlu0 %573 }
 0x42a   :  { %v596_v36 = vsub.f32 %v302_v12, %v574_v35 }
 0x42b   :  { %v606_v37 = vmul.f32 1.442695, %v597_v34 }
 0x42c   :  { %v604_v38 = vmul.f32 1.442695, %v596_v36 }
 0x42d   :  { %2765 = vpow2.f32 %v606_v37 }
 0x42e   :  { %2767 = vpow2.f32 %v604_v38 }
 0x437   :  { %v3111_v39 = vpop.eup %2765 }
 0x438   :  { %v2768_v40 = vpop.eup %2767  ;;  %v623_v41 = vsel %vm571_vm3, %v3111_v39, 0.0 }
 0x439   :  { %624 = vadd.xlane.f32.xlu1 %v623_v41  ;;  %v620_v42 = vsel %vm571_vm3, %v2768_v40, 0.0 }
 0x43a   :  { %621 = vadd.xlane.f32.xlu0 %v620_v42 }
 0x495   :  { %v583_v43 = vpop.xlane.xlu0 %582 }
 0x496   :  { %v599_v45 = vsub.f32 %v394_v16, %v583_v43 }
 0x498   :  { %v610_v46 = vmul.f32 1.442695, %v599_v45 }
 0x499   :  { %v580_v48 = vpop.xlane.xlu0 %579 }
 0x49a   :  { %2769 = vpow2.f32 %v610_v46  ;;  %v598_v49 = vsub.f32 %v389_v18, %v580_v48 }
 0x49c   :  { %v608_v50 = vmul.f32 1.442695, %v598_v49  ;;  %v589_v52 = vpop.xlane.xlu1 %588 }
 0x49d   :  { %v601_v53 = vsub.f32 %v481_v22, %v589_v52  ;;  %v586_v54 = vpop.xlane.xlu0 %585 }
 0x49e   :  { %2771 = vpow2.f32 %v608_v50  ;;  %v600_v56 = vsub.f32 %v476_v24, %v586_v54 }
 0x49f   :  { %v614_v57 = vmul.f32 1.442695, %v601_v53 }
 0x4a0   :  { %v612_v59 = vmul.f32 1.442695, %v600_v56  ;;  %v595_v60 = vpop.xlane.xlu1 %594  ;;  %v1039_v56 = vld [vmem:[#allocation6] sm:$0xff] }
 0x4a1   :  { %2773 = vpow2.f32 %v614_v57  ;;  %v603_v61 = vsub.f32 %v568_v28, %v595_v60  ;;  %v592_v62 = vpop.xlane.xlu0 %591  ;;  %v1040_v57 = vld [vmem:[#allocation6 + $0x8] sm:$0xff]  ;;  %v1041_v60 = vld [vmem:[#allocation6 + $0x10] sm:$0xff] }
 0x4a2   :  { %2775 = vpow2.f32 %v612_v59  ;;  %v602_v63 = vsub.f32 %v563_v30, %v592_v62  ;;  %v2605_v59 = vpack.c.bf16 %v1040_v57, %v1039_v56 }
 0x4a3   :  { %v618_v0 = vmul.f32 1.442695, %v603_v61  ;;  %v1042_v61 = vld [vmem:[#allocation6 + $0x18] sm:$0xff] }
 0x4a4   :  { %v3116_v1 = vpop.eup %2769  ;;  %v616_v2 = vmul.f32 1.442695, %v602_v63  ;;  %2606 = vmatprep.subr.bf16.mxu0 %v2605_v59  ;;  %v2609_v62 = vpack.c.bf16 %v1042_v61, %v1041_v60 }
 0x4a5   :  { %2777 = vpow2.f32 %v618_v0  ;;  %v629_v3 = vsel %vm571_vm3, %v3116_v1, 0.0  ;;  %2608 = vmatpush3.bf16.msra.mxu0 %v2605_v59 }
 0x4a6   :  { %2779 = vpow2.f32 %v616_v2  ;;  %630 = vadd.xlane.f32.xlu1 %v629_v3  ;;  %2610 = vmatprep.subr.bf16.mxu0 %v2609_v62 }
 0x4a8   :  { %v2772_v4 = vpop.eup %2771 }
 0x4a9   :  { %v626_v5 = vsel %vm571_vm3, %v2772_v4, 0.0  ;;  %2612 = vmatpush3.bf16.msra.mxu0 %v2609_v62 }
 0x4aa   :  { %627 = vadd.xlane.f32.xlu0 %v626_v5 }
 0x4ab   :  { %v3121_v6 = vpop.eup %2773 }
 0x4ac   :  { %v3123_v9 = vpop.eup %2775  ;;  %v635_v10 = vsel %vm571_vm3, %v3121_v6, 0.0 }
 0x4ad   :  { %636 = vadd.xlane.f32.xlu1 %v635_v10  ;;  %v632_v11 = vsel %vm571_vm3, %v3123_v9, 0.0 }
 0x4ae   :  { %633 = vadd.xlane.f32.xlu0 %v632_v11 }
 0x4af   :  { %v3129_v12 = vpop.eup %2777 }
 0x4b0   :  { %v3131_v13 = vpop.eup %2779  ;;  %v641_v14 = vsel %vm571_vm3, %v3129_v12, 0.0 }
 0x4b1   :  { %642 = vadd.xlane.f32.xlu1 %v641_v14  ;;  %v638_v15 = vsel %vm571_vm3, %v3131_v13, 0.0 }
 0x4b2   :  { %639 = vadd.xlane.f32.xlu0 %v638_v15 }
 0x4c2   :  { %2707 = vrot.lane.b32.xlu1 %v3044_v47, %s2925_s2 }
 0x4c6   :  { %2712 = vrot.lane.b32.xlu1 %v3049_v51, %s2925_s2  ;;  %v625_v19 = vpop.xlane.xlu1 %624 }
 0x4c7   :  { %v622_v16 = vpop.xlane.xlu0 %621 }
 0x4c8   :  { %2781 = vrcp.f32 %v622_v16  ;;  %2702 = vrot.lane.b32.xlu0 %v3038_v44, %s2925_s2 }
 0x4c9   :  { %2783 = vrcp.f32 %v625_v19 }
 0x4ca   :  { %2717 = vrot.lane.b32.xlu1 %v3059_v58, %s2925_s2 }
 0x4d2   :  { %v2782_v17 = vpop.eup %2781 }
 0x4d3   :  { %v645_v18 = vmul.f32 %v2782_v17, %v2768_v40  ;;  %v2784_v30 = vpop.eup %2783 }
 0x4d4   :  { %v647_v35 = vmul.f32 %v2784_v30, %v3111_v39 }
 0x4d5   :  { %2444 = vmatprep.mubr.msk.f32.mxu1 %vm571_vm3, %v645_v18 }
 0x533   :  { %v631_v20 = vpop.xlane.xlu1 %630 }
 0x537   :  { %v628_v21 = vpop.xlane.xlu0 %627 }
 0x538   :  { %2785 = vrcp.f32 %v628_v21  ;;  %v2274_v21 = vld [vmem:[%s3339_s8] ss:$0 sm:$0xff] }
 0x539   :  { %2787 = vrcp.f32 %v631_v20 }
 0x53a   :  { %v637_v22 = vpop.xlane.xlu1 %636 }
 0x53b   :  { %v634_v47 = vpop.xlane.xlu0 %633 }
 0x53c   :  { %2789 = vrcp.f32 %v634_v47 }
 0x53d   :  { %2791 = vrcp.f32 %v637_v22 }
 0x53e   :  { %v643_v51 = vpop.xlane.xlu1 %642 }
 0x53f   :  { %v640_v23 = vpop.xlane.xlu0 %639 }
 0x540   :  { %2793 = vrcp.f32 %v640_v23 }
 0x541   :  { %2795 = vrcp.f32 %v643_v51 }
 0x542   :  { %v2708_v24 = vpop.permute.xlu1 %2707  ;;  %v2786_v31 = vpop.eup %2785 }
 0x543   :  { %v2703_v44 = vpop.permute.xlu0 %2702  ;;  %v2710_v25 = vunpack.i.h.bf16 %v2708_v24  ;;  %v2709_v26 = vunpack.i.l.bf16 %v2708_v24  ;;  %v2788_v37 = vpop.eup %2787  ;;  %v649_v38 = vmul.f32 %v2786_v31, %v2772_v4 }
 0x544   :  { %v2705_v58 = vunpack.i.h.bf16 %v2703_v44  ;;  %v2704_v27 = vunpack.i.l.bf16 %v2703_v44  ;;  %v651_v45 = vmul.f32 %v2788_v37, %v3116_v1 }
 0x545   :  { %v2593_v32 = vpack.c.bf16 %v2710_v25, %v2709_v26 }
 0x546   :  { %v2589_v28 = vpack.c.bf16 %v2705_v58, %v2704_v27  ;;  %v2713_v29 = vpop.permute.xlu1 %2712  ;;  %v2790_v40 = vpop.eup %2789 }
 0x547   :  { %v2715_v33 = vunpack.i.h.bf16 %v2713_v29  ;;  %v2714_v34 = vunpack.i.l.bf16 %v2713_v29  ;;  %v2792_v46 = vpop.eup %2791  ;;  %v653_v48 = vmul.f32 %v2790_v40, %v3123_v9 }
 0x548   :  { %2590 = vmatprep.subr.bf16.mxu1 %v2589_v28  ;;  %v655_v50 = vmul.f32 %v2792_v46, %v3121_v6 }
 0x549   :  { %2592 = vmatpush3.bf16.msra.mxu1 %v2589_v28  ;;  %v2597_v41 = vpack.c.bf16 %v2715_v33, %v2714_v34 }
 0x54a   :  { %v2718_v36 = vpop.permute.xlu1 %2717  ;;  %2594 = vmatprep.subr.bf16.mxu1 %v2593_v32  ;;  %v2794_v39 = vpop.eup %2793 }
 0x54b   :  { %v2720_v42 = vunpack.i.h.bf16 %v2718_v36  ;;  %v2719_v43 = vunpack.i.l.bf16 %v2718_v36  ;;  %v2796_v52 = vpop.eup %2795  ;;  %v657_v53 = vmul.f32 %v2794_v39, %v3131_v13 }
 0x54c   :  { %2445 = vmatmul.mubr.msk.f32.vlgmr.msra.gmra.mrb[4].mxu1 %vm571_vm3, %v647_v35  ;;  %v659_v54 = vmul.f32 %v2796_v52, %v3129_v12 }
 0x54d   :  { %2596 = vmatpush3.bf16.msra.mxu1 %v2593_v32  ;;  %2451 = vmatprep.mubr.msk.f32.mxu1 %vm571_vm3, %v649_v38  ;;  %v2601_v49 = vpack.c.bf16 %v2720_v42, %v2719_v43 }
 0x54e   :  { %2598 = vmatprep.subr.bf16.mxu1 %v2597_v41 }
 0x550   :  { %2452 = vmatmul.mubr.msk.f32.vlgmr.msra.gmra.mrb[6].mxu1 %vm571_vm3, %v651_v45 }
 0x551   :  { %2600 = vmatpush3.bf16.msra.mxu1 %v2597_v41  ;;  %2458 = vmatprep.mubr.msk.f32.mxu1 %vm571_vm3, %v653_v48 }
 0x552   :  { %2602 = vmatprep.subr.bf16.mxu1 %v2601_v49 }
 0x554   :  { %2459 = vmatmul.mubr.msk.f32.vlgmr.msra.gmra.mrb[8].mxu1 %vm571_vm3, %v655_v50 }
 0x555   :  { %2604 = vmatpush3.bf16.msra.mxu1 %v2601_v49  ;;  %2465 = vmatprep.mubr.msk.f32.mxu1 %vm571_vm3, %v657_v53 }
 0x558   :  { %2466 = vmatmul.mubr.msk.f32.vlgmr.msra.gmra.mrb[10].mxu1 %vm571_vm3, %v659_v54 }
 0x61f   :  { %v2446_v63 = vpop.f32.mrb[4].mxu1 }
 0x620   :  { %v738_v0 = vpop.f32.mrb[5].mxu1 }
 0x623   :  { %v2453_v1 = vpop.f32.mrb[6].mxu1 }
 0x624   :  { %1012 = vrot.lane.b32.xlu1 %v2453_v1, %s2919_s20  ;;  %v825_v2 = vpop.f32.mrb[7].mxu1 }
 0x625   :  { %1010 = vrot.lane.b32.xlu0 %v825_v2, %s2919_s20 }
 0x627   :  { %v2460_v3 = vpop.f32.mrb[8].mxu1 }
 0x628   :  { %1020 = vrot.lane.b32.xlu1 %v2460_v3, %s2926_s12  ;;  %v912_v4 = vpop.f32.mrb[9].mxu1  ;;  %v1210_v3 = vld [vmem:[#allocation3 + $0x20] sm:$0xff] }
 0x629   :  { %1018 = vrot.lane.b32.xlu0 %v912_v4, %s2926_s12  ;;  %v1211_v4 = vld [vmem:[#allocation3 + $0x28] sm:$0xff] }
 0x62b   :  { %v2467_v5 = vpop.f32.mrb[10].mxu1 }
 0x62c   :  { %1028 = vrot.lane.b32.xlu1 %v2467_v5, %s2927_s5  ;;  %v999_v6 = vpop.f32.mrb[11].mxu1  ;;  %v2613_v5 = vpack.c.bf16 %v1211_v4, %v1210_v3 }
 0x62d   :  { %1026 = vrot.lane.b32.xlu0 %v999_v6, %s2927_s5  ;;  %v1212_v6 = vld [vmem:[#allocation3 + $0x30] sm:$0xff] }
 0x62e   :  { %2614 = vmatprep.subr.bf16.mxu1 %v2613_v5 }
 0x62f   :  { %2616 = vmatpush3.bf16.msra.mxu1 %v2613_v5 }
 0x696   :  { %v1013_v9 = vpop.permute.xlu1 %1012 }
 0x697   :  { %v1011_v10 = vpop.permute.xlu0 %1010  ;;  %v1033_v15 = vsel %vm226_vm1, %v2446_v63, %v1013_v9  ;;  %v1213_v9 = vld [vmem:[#allocation3 + $0x38] sm:$0xff] }
 0x698   :  { %v1032_v13 = vsel %vm226_vm1, %v738_v0, %v1011_v10  ;;  %v2617_v10 = vpack.c.bf16 %v1213_v9, %v1212_v6 }
 0x69a   :  { %v1021_v11 = vpop.permute.xlu1 %1020  ;;  %2618 = vmatprep.subr.bf16.mxu1 %v2617_v10 }
 0x69b   :  { %v1019_v12 = vpop.permute.xlu0 %1018  ;;  %v1035_v18 = vsel %vm571_vm3, %v1033_v15, %v1021_v11  ;;  %2620 = vmatpush3.bf16.msra.mxu1 %v2617_v10 }
 0x69c   :  { %v1034_v16 = vsel %vm571_vm3, %v1032_v13, %v1019_v12 }
 0x69e   :  { %v1029_v14 = vpop.permute.xlu1 %1028 }
 0x69f   :  { %v1027_v17 = vpop.permute.xlu0 %1026  ;;  %v1038_v20 = vsel %vm1036_vm4, %v1035_v18, %v1029_v14  ;;  %v2278_v18 = vld [vmem:[%s3334_s3 + $0x1] ss:$0 sm:$0xff] }
 0x6a0   :  { %v1037_v19 = vsel %vm1036_vm4, %v1034_v16, %v1027_v17 }
 0x6a1   :  { %2476 = vmatprep.mubr.msk.f32.mxu0 %vm70_vm0, %v1037_v19 }
 0x6a2   :  { %2477 = vmatmul.mubr.msk.f32.vlgmr.msra.gmra.mrb[6].mxu0 %vm70_vm0, %v1038_v20  ;;  %v2280_v20 = vld [vmem:[%s3335_s4 + $0x1] ss:$0 sm:$0xff] }
 0x775   :  { %v2478_v22 = vpop.f32.mrb[6].mxu0 }
 0x776   :  { %v1128_v47 = vadd.f32 %v2478_v22, %v2274_v21  ;;  %v1122_v51 = vpop.f32.mrb[7].mxu0 }
 0x777   :  { %v1123_v23 = vadd.f32 %v2274_v21, %v1122_v51 }
 0x778   :  { %v1134_v24 = vmin.f32 %v1128_v47, 20.0  ;;  %vm1132_vm6 = vcmp.gt.f32.partialorder %v1128_v47, 20.0 }
 0x779   :  { %v1133_v44 = vmin.f32 %v1123_v23, 20.0  ;;  %vm1131_vm8 = vcmp.gt.f32.partialorder %v1123_v23, 20.0 }
 0x77a   :  { %v1137_v25 = vmul.f32 1.442695, %v1134_v24 }
 0x77b   :  { %v1135_v26 = vmul.f32 1.442695, %v1133_v44  ;;  %v2282_v44 = vld [vmem:[%s3337_s6 + $0x1] ss:$0 sm:$0xff]  ;;  %s2928_s6 = smov [#allocation8]  }
 0x77c   :  { %2797 = vpow2.f32 %v1137_v25  ;;  %s2232_s1 = sshll.u32 %s2928_s6, 4  ;;  %s2233_s1 = int_to_ptr.vmem [resolvable:$true] %s2232_s1 }
 0x77d   :  { %2799 = vpow2.f32 %v1135_v26  ;;  %s2889_s7 = scalar_lea.vmem %s2233_s1, 256  ;;  %p2894_p3 = scmp.lt.s32.totalorder %s2233_s1, %s2233_s1 }
 0x77e   :  { %p2890_p2 = scmp.ne.s32.totalorder %s2233_s1, %s2889_s7  ;;  %p2895_p4 = scmp.lt.s32.totalorder %s2889_s7, %s2889_s7 }
 0x780   :  { %p2896_p5 = por %p2895_p4, %p2894_p3 }
 0x782   :  { %p2897_p6 = pnand %p2896_p5, %p2890_p2 }
 0x786   :  { %v2798_v58 = vpop.eup %2797 }
 0x787   :  { %v2800_v27 = vpop.eup %2799  ;;  %v1148_v28 = vadd.f32 1.0, %v2798_v58  ;;  %v1151_v30 = vmul.f32 -0.5, %v2798_v58  ;;  %v1154_v33 = vand.u32 2147483647, %v2798_v58 }
 0x788   :  { %v1139_v29 = vadd.f32 1.0, %v2800_v27  ;;  %v1142_v31 = vmul.f32 -0.5, %v2800_v27  ;;  %v1145_v35 = vand.u32 2147483647, %v2800_v27 }
 0x789   :  { %2801 = vlog2.f32 %v1148_v28  ;;  %v1152_v32 = vadd.f32 1.0, %v1151_v30  ;;  %vm1155_vm5 = vcmp.lt.f32.partialorder %v1154_v33, 0.0004427343 }
 0x78a   :  { %2803 = vlog2.f32 %v1139_v29  ;;  %v1143_v34 = vadd.f32 1.0, %v1142_v31  ;;  %vm1146_vm7 = vcmp.lt.f32.partialorder %v1145_v35, 0.0004427343 }
 0x78b   :  { %v1153_v40 = vmul.f32 %v2798_v58, %v1152_v32 }
 0x78c   :  { %v1144_v42 = vmul.f32 %v2800_v27, %v1143_v34 }
 0x793   :  { %v2802_v36 = vpop.eup %2801 }
 0x794   :  { %v2804_v37 = vpop.eup %2803  ;;  %v1150_v38 = vmul.f32 0.6931472, %v2802_v36 }
 0x795   :  { %v1141_v41 = vmul.f32 0.6931472, %v2804_v37 }
 0x796   :  { %v1156_v43 = vsel %vm1155_vm5, %v1153_v40, %v1150_v38 }
 0x797   :  { %v1158_v45 = vsel %vm1132_vm6, %v1128_v47, %v1156_v43  ;;  %v1147_v46 = vsel %vm1146_vm7, %v1144_v42, %v1141_v41 }
 0x798   :  { %2805 = vtanh.f32 %v1158_v45  ;;  %v1157_v48 = vsel %vm1131_vm8, %v1123_v23, %v1147_v46 }
 0x799   :  { %2807 = vtanh.f32 %v1157_v48 }
 0x7a2   :  { %v2806_v39 = vpop.eup %2805 }
 0x7a3   :  { %v2808_v49 = vpop.eup %2807  ;;  %v1162_v50 = vmul.f32 %v2806_v39, %v1128_v47 }
 0x7a4   :  { %v1161_v52 = vmul.f32 %v2808_v49, %v1123_v23 }
 0x7a5   :  { %v1166_v53 = vsel %vm70_vm0, %v1162_v50, 0.0 }
 0x7a6   :  { %1167 = vadd.xlane.f32.xlu1 %v1166_v53  ;;  %v1163_v54 = vsel %vm70_vm0, %v1161_v52, 0.0 }
 0x7a7   :  { %1164 = vadd.xlane.f32.xlu0 %v1163_v54 }
 0x833   :  { %v1168_v56 = vpop.xlane.xlu1 %1167 }
 0x834   :  { %v1170_v57 = vmul.f32 0.03125, %v1168_v56  ;;  %v1165_v59 = vpop.xlane.xlu0 %1164 }
 0x835   :  { %v1169_v60 = vmul.f32 0.03125, %v1165_v59 }
 0x836   :  { %v1172_v61 = vsub.f32 %v1162_v50, %v1170_v57 }
 0x837   :  { %v1171_v62 = vsub.f32 %v1161_v52, %v1169_v60 }
 0x838   :  { %v1174_v1 = vmul.f32 %v1172_v61, %v1172_v61 }
 0x839   :  { %v1173_v63 = vmul.f32 %v1171_v62, %v1171_v62 }
 0x83a   :  { %v1178_v2 = vsel %vm70_vm0, %v1174_v1, 0.0 }
 0x83b   :  { %v1175_v0 = vsel %vm70_vm0, %v1173_v63, 0.0 }
 0x83c   :  { %1176 = vadd.xlane.f32.xlu0 %v1175_v0 }
 0x840   :  { %1179 = vadd.xlane.f32.xlu0 %v1178_v2 }
 0x8c9   :  { %v1177_v11 = vpop.xlane.xlu0 %1176 }
 0x8ca   :  { %v1181_v12 = vmul.f32 0.03125, %v1177_v11 }
 0x8cc   :  { %v1183_v13 = vadd.f32 1e-05, %v1181_v12 }
 0x8cd   :  { %v1180_v14 = vpop.xlane.xlu0 %1179 }
 0x8ce   :  { %2809 = vrsqrt.f32 %v1183_v13  ;;  %v1182_v15 = vmul.f32 0.03125, %v1180_v14 }
 0x8d0   :  { %v1184_v16 = vadd.f32 1e-05, %v1182_v15 }
 0x8d2   :  { %2811 = vrsqrt.f32 %v1184_v16 }
 0x8d8   :  { %v2810_v17 = vpop.eup %2809 }
 0x8d9   :  { %v1187_v19 = vmul.f32 %v2810_v17, %v1171_v62 }
 0x8db   :  { %v1197_v21 = vmul.f32 %v2278_v18, %v1187_v19 }
 0x8dc   :  { %v2812_v22 = vpop.eup %2811 }
 0x8dd   :  { %v1188_v47 = vmul.f32 %v2812_v22, %v1172_v61  ;;  %v1207_v51 = vadd.f32 %v2280_v20, %v1197_v21 }
 0x8df   :  { %v1198_v23 = vmul.f32 %v2278_v18, %v1188_v47  ;;  %2487 = vmatprep.mubr.msk.f32.mxu1 %vm70_vm0, %v1207_v51 }
 0x8e1   :  { %v1208_v24 = vadd.f32 %v2280_v20, %v1198_v23 }
 0x8e3   :  { %2488 = vmatmul.mubr.msk.f32.vlgmr.msra.gmra.mrb[12].mxu1 %vm70_vm0, %v1208_v24 }
 0x9b6   :  { %v2489_v25 = vpop.f32.mrb[12].mxu1 }
 0x9b7   :  { %v1300_v26 = vadd.f32 %v2489_v25, %v2282_v44  ;;  %v1294_v58 = vpop.f32.mrb[13].mxu1 }
 0x9b8   :  { %v1295_v27 = vadd.f32 %v2282_v44, %v1294_v58 }
 0x9b9   :  { %1307 = vrot.lane.b32.xlu1 %v1300_v26, %s2921_s24 }
 0x9ba   :  { %1305 = vrot.lane.b32.xlu0 %v1295_v27, %s2921_s24  ;;  %2494 = vmatprep.mubr.msk.f32.mxu0 %vm226_vm1, %v1295_v27  ;;  %v3196_v28 = vpack.i.bf16 %v1300_v26, %v1295_v27 }
 0x9bd   :  { %1311 = vrot.lane.b32.xlu1 %v1300_v26, %s2922_s25 }
 0x9be   :  { %1313 = vrot.lane.b32.xlu0 %v1295_v27, %s2923_s26 }
 0x9c1   :  { %1309 = vrot.lane.b32.xlu1 %v1295_v27, %s2922_s25 }
 0x9c2   :  { %2722 = vrot.lane.b32.xlu0 %v3196_v28, %s2924_s27 }
 0x9c5   :  { %1315 = vrot.lane.b32.xlu1 %v1300_v26, %s2923_s26 }
 0xa2b   :  { %v1308_v29 = vpop.permute.xlu1 %1307 }
 0xa2c   :  { %v1306_v30 = vpop.permute.xlu0 %1305 }
 0xa2d   :  { %v3202_v31 = vpack.i.bf16 %v1308_v29, %v1306_v30  ;;  %2501 = vmatprep.mubr.msk.f32.mxu1 %vm226_vm1, %v1306_v30 }
 0xa2f   :  { %v1312_v32 = vpop.permute.xlu1 %1311  ;;  %2727 = vrot.lane.b32.xlu1 %v3202_v31, %s2924_s27 }
 0xa30   :  { %v1314_v33 = vpop.permute.xlu0 %1313 }
 0xa33   :  { %v1310_v34 = vpop.permute.xlu1 %1309 }
 0xa34   :  { %v3207_v35 = vpack.i.bf16 %v1312_v32, %v1310_v34  ;;  %v2723_v36 = vpop.permute.xlu0 %2722 }
 0xa35   :  { %v2725_v37 = vunpack.i.h.bf16 %v2723_v36  ;;  %v2724_v38 = vunpack.i.l.bf16 %v2723_v36 }
 0xa36   :  { %2732 = vrot.lane.b32.xlu0 %v3207_v35, %s2924_s27 }
 0xa37   :  { %v2621_v40 = vpack.c.bf16 %v2725_v37, %v2724_v38  ;;  %v1316_v41 = vpop.permute.xlu1 %1315 }
 0xa38   :  { %v3211_v42 = vpack.i.bf16 %v1316_v41, %v1314_v33 }
 0xa39   :  { %2623 = vmatprep.subr.msk.bf16.mxu0 %vm3055_vm2, %v2621_v40 }
 0xa3a   :  { %2737 = vrot.lane.b32.xlu1 %v3211_v42, %s2924_s27  ;;  %2626 = vmatpush3.bf16.xpose.msk.msra.mxu0 %vm3055_vm2, %v2621_v40 }
 0xa41   :  { %2495 = vmatmul.mubr.msk.f32.vlgmr.msra.gmra.mrb[8].mxu0 %vm226_vm1, %v1300_v26 }
 0xa42   :  { %2508 = vmatprep.mubr.msk.f32.mxu0 %vm226_vm1, %v1310_v34 }
 0xaa1   :  { %v2728_v43 = vpop.permute.xlu1 %2727 }
 0xaa2   :  { %v2730_v45 = vunpack.i.h.bf16 %v2728_v43  ;;  %v2729_v46 = vunpack.i.l.bf16 %v2728_v43 }
 0xaa4   :  { %v2627_v48 = vpack.c.bf16 %v2730_v45, %v2729_v46 }
 0xaa6   :  { %2629 = vmatprep.subr.msk.bf16.mxu1 %vm3055_vm2, %v2627_v48 }
 0xaa7   :  { %2632 = vmatpush3.bf16.xpose.msk.msra.mxu1 %vm3055_vm2, %v2627_v48 }
 0xaa8   :  { %v2733_v39 = vpop.permute.xlu0 %2732 }
 0xaa9   :  { %v2735_v49 = vunpack.i.h.bf16 %v2733_v39  ;;  %v2734_v50 = vunpack.i.l.bf16 %v2733_v39 }
 0xaab   :  { %v2633_v52 = vpack.c.bf16 %v2735_v49, %v2734_v50 }
 0xaac   :  { %v2738_v53 = vpop.permute.xlu1 %2737 }
 0xaad   :  { %v2740_v54 = vunpack.i.h.bf16 %v2738_v53  ;;  %v2739_v56 = vunpack.i.l.bf16 %v2738_v53  ;;  %2635 = vmatprep.subr.msk.bf16.mxu0 %vm3055_vm2, %v2633_v52 }
 0xaae   :  { %2502 = vmatmul.mubr.msk.f32.vlgmr.msra.gmra.mrb[14].mxu1 %vm226_vm1, %v1308_v29  ;;  %2638 = vmatpush3.bf16.xpose.msk.msra.mxu0 %vm3055_vm2, %v2633_v52 }
 0xaaf   :  { %v2639_v57 = vpack.c.bf16 %v2740_v54, %v2739_v56  ;;  %2515 = vmatprep.mubr.msk.f32.mxu1 %vm226_vm1, %v1314_v33 }
 0xab1   :  { %2641 = vmatprep.subr.msk.bf16.mxu1 %vm3055_vm2, %v2639_v57 }
 0xab2   :  { %2644 = vmatpush3.bf16.xpose.msk.msra.mxu1 %vm3055_vm2, %v2639_v57 }
 0xab5   :  { %2509 = vmatmul.mubr.msk.f32.vlgmr.msra.gmra.mrb[10].mxu0 %vm226_vm1, %v1312_v32 }
 0xab9   :  { %2516 = vmatmul.mubr.msk.f32.vlgmr.msra.gmra.mrb[16].mxu1 %vm226_vm1, %v1316_v41 }
 0xb14   :  { %v2496_v59 = vpop.f32.mrb[8].mxu0 }
 0xb15   :  { %v1401_v60 = vadd.f32 %v2496_v59, %v3088_v7  ;;  %v1395_v61 = vpop.f32.mrb[9].mxu0 }
 0xb16   :  { %v1396_v62 = vadd.f32 %v1395_v61, %v3093_v8 }
 0xb17   :  { %v1668_v63 = vsel %vm571_vm3, %v1401_v60, -inf }
 0xb18   :  { %1669 = vmax.xlane.f32.xlu1 %v1668_v63  ;;  %v1665_v0 = vsel %vm571_vm3, %v1396_v62, -inf }
 0xb19   :  { %1666 = vmax.xlane.f32.xlu0 %v1665_v0 }
 0xb81   :  { %v2503_v1 = vpop.f32.mrb[14].mxu1 }
 0xb82   :  { %v1488_v55 = vadd.f32 %v2503_v1, %v3088_v7  ;;  %v1482_v2 = vpop.f32.mrb[15].mxu1 }
 0xb83   :  { %v1483_v3 = vadd.f32 %v1482_v2, %v3093_v8 }
 0xb84   :  { %v1674_v4 = vsel %vm571_vm3, %v1488_v55, -inf }
 0xb85   :  { %1675 = vmax.xlane.f32.xlu0 %v1674_v4  ;;  %v1671_v6 = vsel %vm571_vm3, %v1483_v3, -inf }
 0xb88   :  { %v2510_v5 = vpop.f32.mrb[10].mxu0 }
 0xb89   :  { %v1575_v9 = vadd.f32 %v2510_v5, %v3088_v7  ;;  %v1569_v10 = vpop.f32.mrb[11].mxu0  ;;  %1672 = vmax.xlane.f32.xlu0 %v1671_v6 }
 0xb8a   :  { %v1570_v11 = vadd.f32 %v1569_v10, %v3093_v8 }
 0xb8b   :  { %v1680_v12 = vsel %vm571_vm3, %v1575_v9, -inf }
 0xb8c   :  { %v2517_v13 = vpop.f32.mrb[16].mxu1  ;;  %1681 = vmax.xlane.f32.xlu1 %v1680_v12  ;;  %v1677_v14 = vsel %vm571_vm3, %v1570_v11, -inf }
 0xb8d   :  { %v1662_v15 = vadd.f32 %v2517_v13, %v3088_v7  ;;  %v1656_v16 = vpop.f32.mrb[17].mxu1  ;;  %1678 = vmax.xlane.f32.xlu0 %v1677_v14 }
 0xb8e   :  { %v1657_v17 = vadd.f32 %v1656_v16, %v3093_v8 }
 0xb8f   :  { %v1686_v18 = vsel %vm571_vm3, %v1662_v15, -inf }
 0xb90   :  { %1687 = vmax.xlane.f32.xlu1 %v1686_v18  ;;  %v1683_v19 = vsel %vm571_vm3, %v1657_v17, -inf }
 0xb91   :  { %1684 = vmax.xlane.f32.xlu0 %v1683_v19 }
 0xba5   :  { %v1670_v20 = vpop.xlane.xlu1 %1669 }
 0xba6   :  { %v1690_v21 = vsub.f32 %v1401_v60, %v1670_v20  ;;  %v1667_v22 = vpop.xlane.xlu0 %1666 }
 0xba7   :  { %v1689_v47 = vsub.f32 %v1396_v62, %v1667_v22 }
 0xba8   :  { %v1699_v51 = vmul.f32 1.442695, %v1690_v21 }
 0xba9   :  { %v1697_v23 = vmul.f32 1.442695, %v1689_v47 }
 0xbaa   :  { %2813 = vpow2.f32 %v1699_v51 }
 0xbab   :  { %2815 = vpow2.f32 %v1697_v23 }
 0xbb4   :  { %v3253_v24 = vpop.eup %2813 }
 0xbb5   :  { %v2816_v7 = vpop.eup %2815  ;;  %v1716_v8 = vsel %vm571_vm3, %v3253_v24, 0.0 }
 0xbb6   :  { %1717 = vadd.xlane.f32.xlu1 %v1716_v8  ;;  %v1713_v44 = vsel %vm571_vm3, %v2816_v7, 0.0 }
 0xbb7   :  { %1714 = vadd.xlane.f32.xlu0 %v1713_v44 }
 0xc12   :  { %v1676_v25 = vpop.xlane.xlu0 %1675 }
 0xc13   :  { %v1692_v26 = vsub.f32 %v1488_v55, %v1676_v25 }
 0xc15   :  { %v1703_v58 = vmul.f32 1.442695, %v1692_v26 }
 0xc16   :  { %v1673_v27 = vpop.xlane.xlu0 %1672 }
 0xc17   :  { %2817 = vpow2.f32 %v1703_v58  ;;  %v1691_v29 = vsub.f32 %v1483_v3, %v1673_v27 }
 0xc19   :  { %v1701_v30 = vmul.f32 1.442695, %v1691_v29  ;;  %v1682_v32 = vpop.xlane.xlu1 %1681 }
 0xc1a   :  { %v1694_v33 = vsub.f32 %v1575_v9, %v1682_v32  ;;  %v1679_v34 = vpop.xlane.xlu0 %1678  ;;  %v2132_v32 = vld [vmem:[#allocation6 + $0x20] sm:$0xff] }
 0xc1b   :  { %2819 = vpow2.f32 %v1701_v30  ;;  %v1693_v36 = vsub.f32 %v1570_v11, %v1679_v34 }
 0xc1c   :  { %v1707_v37 = vmul.f32 1.442695, %v1694_v33  ;;  %v2133_v33 = vld [vmem:[#allocation6 + $0x28] sm:$0xff] }
 0xc1d   :  { %v1705_v38 = vmul.f32 1.442695, %v1693_v36  ;;  %v1688_v40 = vpop.xlane.xlu1 %1687  ;;  %v2661_v34 = vpack.c.bf16 %v2133_v33, %v2132_v32  ;;  %v2134_v36 = vld [vmem:[#allocation6 + $0x30] sm:$0xff] }
 0xc1e   :  { %2821 = vpow2.f32 %v1707_v37  ;;  %v1696_v41 = vsub.f32 %v1662_v15, %v1688_v40  ;;  %v1685_v43 = vpop.xlane.xlu0 %1684  ;;  %v2135_v37 = vld [vmem:[#allocation6 + $0x38] sm:$0xff] }
 0xc1f   :  { %2823 = vpow2.f32 %v1705_v38  ;;  %v1695_v45 = vsub.f32 %v1657_v17, %v1685_v43  ;;  %v2665_v38 = vpack.c.bf16 %v2135_v37, %v2134_v36 }
 0xc20   :  { %v1711_v46 = vmul.f32 1.442695, %v1696_v41 }
 0xc21   :  { %v3258_v48 = vpop.eup %2817  ;;  %v1709_v39 = vmul.f32 1.442695, %v1695_v45 }
 0xc22   :  { %2825 = vpow2.f32 %v1711_v46  ;;  %v1722_v49 = vsel %vm571_vm3, %v3258_v48, 0.0 }
 0xc23   :  { %2827 = vpow2.f32 %v1709_v39  ;;  %1723 = vadd.xlane.f32.xlu1 %v1722_v49 }
 0xc25   :  { %v2820_v50 = vpop.eup %2819 }
 0xc26   :  { %v1719_v52 = vsel %vm571_vm3, %v2820_v50, 0.0 }
 0xc27   :  { %1720 = vadd.xlane.f32.xlu0 %v1719_v52 }
 0xc28   :  { %v3263_v53 = vpop.eup %2821 }
 0xc29   :  { %v3265_v54 = vpop.eup %2823  ;;  %v1728_v56 = vsel %vm571_vm3, %v3263_v53, 0.0 }
 0xc2a   :  { %1729 = vadd.xlane.f32.xlu1 %v1728_v56  ;;  %v1725_v57 = vsel %vm571_vm3, %v3265_v54, 0.0 }
 0xc2b   :  { %1726 = vadd.xlane.f32.xlu0 %v1725_v57 }
 0xc2c   :  { %v3271_v59 = vpop.eup %2825 }
 0xc2d   :  { %v2828_v60 = vpop.eup %2827  ;;  %v1734_v61 = vsel %vm571_vm3, %v3271_v59, 0.0 }
 0xc2e   :  { %1735 = vadd.xlane.f32.xlu1 %v1734_v61  ;;  %v1731_v62 = vsel %vm571_vm3, %v2828_v60, 0.0 }
 0xc2f   :  { %1732 = vadd.xlane.f32.xlu0 %v1731_v62 }
 0xc3f   :  { %2747 = vrot.lane.b32.xlu1 %v3202_v31, %s2925_s2 }
 0xc43   :  { %2752 = vrot.lane.b32.xlu1 %v3207_v35, %s2925_s2  ;;  %v1718_v55 = vpop.xlane.xlu1 %1717 }
 0xc44   :  { %v1715_v63 = vpop.xlane.xlu0 %1714 }
 0xc45   :  { %2829 = vrcp.f32 %v1715_v63  ;;  %2742 = vrot.lane.b32.xlu0 %v3196_v28, %s2925_s2 }
 0xc47   :  { %2757 = vrot.lane.b32.xlu1 %v3211_v42, %s2925_s2 }
 0xc4f   :  { %v2830_v0 = vpop.eup %2829 }
 0xc50   :  { %v1738_v1 = vmul.f32 %v2830_v0, %v2816_v7 }
 0xc52   :  { %2522 = vmatprep.mubr.msk.f32.mxu0 %vm571_vm3, %v1738_v1  ;;  %v2310_v1 = vld [vmem:[%s3339_s8 + $0x1] ss:$0 sm:$0xff] }
 0xcb0   :  { %v1724_v2 = vpop.xlane.xlu1 %1723 }
 0xcb4   :  { %v1721_v3 = vpop.xlane.xlu0 %1720 }
 0xcb5   :  { %2831 = vrcp.f32 %v1721_v3 }
 0xcb6   :  { %2833 = vrcp.f32 %v1724_v2 }
 0xcb7   :  { %v1730_v31 = vpop.xlane.xlu1 %1729  ;;  %2835 = vrcp.f32 %v1718_v55 }
 0xcb8   :  { %v1727_v4 = vpop.xlane.xlu0 %1726 }
 0xcb9   :  { %2837 = vrcp.f32 %v1727_v4 }
 0xcbb   :  { %v1736_v35 = vpop.xlane.xlu1 %1735 }
 0xcbc   :  { %v1733_v5 = vpop.xlane.xlu0 %1732 }
 0xcbd   :  { %2839 = vrcp.f32 %v1733_v5 }
 0xcbe   :  { %2841 = vrcp.f32 %v1730_v31 }
 0xcbf   :  { %v2832_v28 = vpop.eup %2831  ;;  %v2748_v6 = vpop.permute.xlu1 %2747  ;;  %2843 = vrcp.f32 %v1736_v35 }
 0xcc0   :  { %v2750_v42 = vunpack.i.h.bf16 %v2748_v6  ;;  %v2749_v9 = vunpack.i.l.bf16 %v2748_v6  ;;  %v2743_v10 = vpop.permute.xlu0 %2742  ;;  %v1742_v11 = vmul.f32 %v2832_v28, %v2820_v50  ;;  %v2834_v15 = vpop.eup %2833 }
 0xcc1   :  { %v2745_v12 = vunpack.i.h.bf16 %v2743_v10  ;;  %v2744_v13 = vunpack.i.l.bf16 %v2743_v10  ;;  %v2836_v18 = vpop.eup %2835  ;;  %v1744_v22 = vmul.f32 %v2834_v15, %v3258_v48 }
 0xcc2   :  { %v2649_v14 = vpack.c.bf16 %v2750_v42, %v2749_v9  ;;  %2529 = vmatprep.mubr.msk.f32.mxu1 %vm571_vm3, %v1742_v11  ;;  %v1740_v23 = vmul.f32 %v2836_v18, %v3253_v24 }
 0xcc3   :  { %v2645_v16 = vpack.c.bf16 %v2745_v12, %v2744_v13  ;;  %v2753_v17 = vpop.permute.xlu1 %2752  ;;  %v2838_v21 = vpop.eup %2837 }
 0xcc4   :  { %v2755_v19 = vunpack.i.h.bf16 %v2753_v17  ;;  %v2754_v20 = vunpack.i.l.bf16 %v2753_v17  ;;  %2650 = vmatprep.subr.bf16.mxu1 %v2649_v14  ;;  %v1746_v26 = vmul.f32 %v2838_v21, %v3265_v54 }
 0xcc5   :  { %2646 = vmatprep.subr.bf16.mxu0 %v2645_v16  ;;  %2652 = vmatpush3.bf16.msra.mxu1 %v2649_v14 }
 0xcc6   :  { %v2653_v47 = vpack.c.bf16 %v2755_v19, %v2754_v20  ;;  %2648 = vmatpush3.bf16.msra.mxu0 %v2645_v16 }
 0xcc7   :  { %v2840_v51 = vpop.eup %2839  ;;  %v2758_v7 = vpop.permute.xlu1 %2757 }
 0xcc8   :  { %v2842_v8 = vpop.eup %2841  ;;  %v2760_v44 = vunpack.i.h.bf16 %v2758_v7  ;;  %v2759_v25 = vunpack.i.l.bf16 %v2758_v7  ;;  %2530 = vmatmul.mubr.msk.f32.vlgmr.msra.gmra.mrb[18].mxu1 %vm571_vm3, %v1744_v22  ;;  %2654 = vmatprep.subr.bf16.mxu0 %v2653_v47  ;;  %v1750_v58 = vmul.f32 %v2840_v51, %v2828_v60 }
 0xcc9   :  { %2523 = vmatmul.mubr.msk.f32.vlgmr.msra.gmra.mrb[12].mxu0 %vm571_vm3, %v1740_v23  ;;  %v2844_v29 = vpop.eup %2843  ;;  %v1748_v30 = vmul.f32 %v2842_v8, %v3263_v53 }
 0xcca   :  { %v2657_v27 = vpack.c.bf16 %v2760_v44, %v2759_v25  ;;  %2656 = vmatpush3.bf16.msra.mxu0 %v2653_v47  ;;  %2536 = vmatprep.mubr.msk.f32.mxu0 %vm571_vm3, %v1746_v26  ;;  %v1752_v24 = vmul.f32 %v2844_v29, %v3271_v59 }
 0xccb   :  { %2543 = vmatprep.mubr.msk.f32.mxu1 %vm571_vm3, %v1750_v58  ;;  %2662 = vmatprep.subr.bf16.mxu0 %v2661_v34 }
 0xccc   :  { %2658 = vmatprep.subr.bf16.mxu1 %v2657_v27 }
 0xccd   :  { %2537 = vmatmul.mubr.msk.f32.vlgmr.msra.gmra.mrb[14].mxu0 %vm571_vm3, %v1748_v30  ;;  %2660 = vmatpush3.bf16.msra.mxu1 %v2657_v27 }
 0xcce   :  { %2664 = vmatpush3.bf16.msra.mxu0 %v2661_v34 }
 0xccf   :  { %2666 = vmatprep.subr.bf16.mxu0 %v2665_v38 }
 0xcd0   :  { %2544 = vmatmul.mubr.msk.f32.vlgmr.msra.gmra.mrb[20].mxu1 %vm571_vm3, %v1752_v24 }
 0xcd2   :  { %2668 = vmatpush3.bf16.msra.mxu0 %v2665_v38 }
 0xd9b   :  { %v2531_v40 = vpop.f32.mrb[18].mxu1 }
 0xd9c   :  { %2105 = vrot.lane.b32.xlu1 %v2531_v40, %s2919_s20  ;;  %v2524_v41 = vpop.f32.mrb[12].mxu0  ;;  %v1918_v43 = vpop.f32.mrb[19].mxu1 }
 0xd9d   :  { %2103 = vrot.lane.b32.xlu0 %v1918_v43, %s2919_s20  ;;  %v1831_v45 = vpop.f32.mrb[13].mxu0 }
 0xda0   :  { %v2538_v46 = vpop.f32.mrb[14].mxu0 }
 0xda1   :  { %2113 = vrot.lane.b32.xlu1 %v2538_v46, %s2926_s12  ;;  %v2005_v48 = vpop.f32.mrb[15].mxu0 }
 0xda2   :  { %2111 = vrot.lane.b32.xlu0 %v2005_v48, %s2926_s12 }
 0xda3   :  { %v2545_v39 = vpop.f32.mrb[20].mxu1 }
 0xda4   :  { %v2092_v49 = vpop.f32.mrb[21].mxu1 }
 0xda5   :  { %2121 = vrot.lane.b32.xlu1 %v2545_v39, %s2927_s5 }
 0xda6   :  { %2119 = vrot.lane.b32.xlu0 %v2092_v49, %s2927_s5 }
 0xe0e   :  { %v2106_v50 = vpop.permute.xlu1 %2105 }
 0xe0f   :  { %v2104_v52 = vpop.permute.xlu0 %2103  ;;  %v2126_v59 = vsel %vm226_vm1, %v2524_v41, %v2106_v50 }
 0xe10   :  { %v2125_v56 = vsel %vm226_vm1, %v1831_v45, %v2104_v52 }
 0xe13   :  { %v2114_v53 = vpop.permute.xlu1 %2113 }
 0xe14   :  { %v2112_v54 = vpop.permute.xlu0 %2111  ;;  %v2128_v62 = vsel %vm571_vm3, %v2126_v59, %v2114_v53 }
 0xe15   :  { %v2127_v60 = vsel %vm571_vm3, %v2125_v56, %v2112_v54 }
 0xe17   :  { %v2122_v57 = vpop.permute.xlu1 %2121 }
 0xe18   :  { %v2120_v61 = vpop.permute.xlu0 %2119  ;;  %v2130_v0 = vsel %vm1036_vm4, %v2128_v62, %v2122_v57 }
 0xe19   :  { %v2129_v63 = vsel %vm1036_vm4, %v2127_v60, %v2120_v61 }
 0xe1a   :  { %2554 = vmatprep.mubr.msk.f32.mxu0 %vm70_vm0, %v2129_v63 }
 0xe1b   :  { %2555 = vmatmul.mubr.msk.f32.vlgmr.msra.gmra.mrb[16].mxu0 %vm70_vm0, %v2130_v0 }
 0xeee   :  { %v2556_v55 = vpop.f32.mrb[16].mxu0 }
 0xeef   :  { %v2222_v2 = vadd.f32 %v2556_v55, %v2310_v1  ;;  %v2216_v3 = vpop.f32.mrb[17].mxu0 }
 0xef0   :  { %v2217_v31 = vadd.f32 %v2310_v1, %v2216_v3 }
 0xef1   :  { %2226 = vst.msk [vmem:[#allocation8 + $0x8] sm:$0xff] %vm70_vm0, %v2222_v2 }
 0xef2   :  { %2225 = vst.msk [vmem:[#allocation8] sm:$0xff] %vm70_vm0, %v2217_v31 }
 0xef3   :  { %2900 = shalt.err (!%p2897_p6)
}
 0xef4   :  { %s2901_s22 = scalar_lea.hbm %s3340_s9, 256 }
 0xef5   :  { %p2902_p7 = scmp.ne.s32.totalorder %s3340_s9, %s2901_s22  ;;  %p2905_p8 = scmp.lt.u32.totalorder %s2901_s22, %s3340_s9 }
 0xef7   :  { %p2907_p9 = pnand %p2905_p8, %p2902_p7 }
 0xef9   :  { %2910 = shalt.err (!%p2907_p9)
}
 0xefa   :  { %2238 = dma.vmem_to_hbm [thread:$0]  %s2233_s1, 256, %s3340_s9, [#allocation5], %s2918_s19, %s2918_s19, %s2919_s20  }
 0xefb   :  { %2915 = dma.done.wait [#allocation5], 256  }
 0xefc   :  { %2916 = vsyncadd [#allocation5], 4294967040 }
 0xefd   :  { %2242 = vsyncpa [#allocation4], 1 }
 0xefe   :  { %2243 = vsyncpa [#allocation7], 1 }
 0xeff   :  { %2244 = vsyncpa [#allocation5], 1 }

</bundles_post_ra>
